<compile_context>
chip_gen: v6e
topology: v6e:2x2x1
jax: 0.10.0
libtpu: 0.0.40
codegen_flags: <defaults>
</compile_context>

<pallas_src>
import functools

import numpy as np
import jax
import jax.numpy as jnp
from jax import lax
from jax.experimental import pallas as pl
from jax.experimental.pallas import tpu as pltpu


# ------------------------------ fused kernel ----------------------------------

def cnn1d_fused_kernel(xg_ref, w1_ref, b1_ref, w2_ref, b2_ref,
                       fw1_ref, fb1_ref, fw2_ref, fb2_ref, fw3t_ref, fb3_ref,
                       o_ref, *, Bb, T1, T2):
    """One batch block per grid step; all activations live in VMEM / vregs.

    Row order inside a block is r = t1*Bb + b_local (time-major, batch fastest), Bb % 8 == 0.

    xg_ref : (5, T1*Bb, 1) f32   xg[s, t1*Bb+b, 0] = xpad[b, 3*t1 + s]   (pool-offset + tap grouping)
    w1_ref : (3, 1, C1)    f32   conv1 weight, tap-major
    b1_ref : (1, C1)       f32
    w2_ref : (3, C1, C2)   bf16  conv2 weight, one (Cin, Cout) matrix per tap
    b2_ref : (1, C2)       f32
    fw1_ref: (T2, C2, H)   bf16  fc1 weight split per pooled time step (rows were c*T2 + t2)
    fw2_ref: (H, H2)       bf16
    fw3t_ref:(OUT, H2)     f32   fc3 weight transposed (OUT==1 -> VPU multiply + lane reduce)
    o_ref  : (Bb, OUT)     f32
    """
    C1 = w1_ref.shape[2]
    C2 = w2_ref.shape[2]
    HID = fw1_ref.shape[2]
    N = T1 * Bb

    # ---- conv block 1: Conv1d(1, C1, 3, padding=1) + Dropout(0) + ReLU + MaxPool1d(3) ----
    # Pure VPU broadcast MACs; broadcasts hoisted out of the loop; ReLU folded into the pool max.
    xb = [jnp.broadcast_to(xg_ref[s], (N, C1)) for s in range(5)]      # x taps, lane-broadcast once
    wb = [jnp.broadcast_to(w1_ref[j], (N, C1)) for j in range(3)]      # w1 rows, sublane-broadcast once
    bb1 = jnp.broadcast_to(b1_ref[...], (N, C1))
    h1 = jnp.zeros((N, C1), jnp.float32)
    for o in range(3):                         # offset inside the pool window
        y = bb1
        for j in range(3):                     # conv tap
            y = y + xb[o + j] * wb[j]
        h1 = jnp.maximum(h1, y)                # max starts at 0 -> ReLU folded in
    # h1: (T1*Bb, C1) == relu(maxpool(conv1)), rows ordered (t1, b)

    # ---- conv block 2: Conv1d(C1, C2, 3, padding=1) + Dropout(0) + ReLU + MaxPool1d(3) ----
    # Time shifts by +/-1 are whole-slab sublane shifts of Bb rows (tile-aligned, O(1) in batch);
    # zero blocks implement padding=1 and prevent any cross-sample mixing.
    zblk = jnp.zeros((Bb, C1), jnp.float32)
    h_prev = jnp.concatenate([zblk, h1[:N - Bb, :]], axis=0)           # h1 at t1-1 (zero at t1==0)
    h_next = jnp.concatenate([h1[Bb:, :], zblk], axis=0)               # h1 at t1+1 (zero at t1==T1-1)

    y2 = jnp.broadcast_to(b2_ref[...], (N, C2))
    y2 = y2 + jnp.dot(h_prev.astype(jnp.bfloat16), w2_ref[0], preferred_element_type=jnp.float32)
    y2 = y2 + jnp.dot(h1.astype(jnp.bfloat16),     w2_ref[1], preferred_element_type=jnp.float32)
    y2 = y2 + jnp.dot(h_next.astype(jnp.bfloat16), w2_ref[2], preferred_element_type=jnp.float32)
    # y2: (T1*Bb, C2) f32 = conv2 output (pre-ReLU), rows ordered (t1, b)

    # ---- MaxPool1d(3) + ReLU fused with fc1 (Linear cnn_out_dim -> H) ----
    # fc1 accumulates T2 matmuls over pooled (Bb, C2) slabs -> no (t,c) flatten relayout at all.
    z = jnp.broadcast_to(fb1_ref[...], (Bb, HID))
    for t2 in range(T2):
        r0 = 3 * t2 * Bb                                               # tile-aligned (Bb % 8 == 0)
        m = jnp.maximum(
            jnp.maximum(y2[r0:r0 + Bb, :], y2[r0 + Bb:r0 + 2 * Bb, :]),
            jnp.maximum(y2[r0 + 2 * Bb:r0 + 3 * Bb, :], 0.0))          # pool3 + ReLU (monotone)
        z = z + jnp.dot(m.astype(jnp.bfloat16), fw1_ref[t2], preferred_element_type=jnp.float32)
    z = jnp.maximum(z, 0.0)

    # ---- fc2 (H -> H//2) + ReLU ----
    z = jnp.dot(z.astype(jnp.bfloat16), fw2_ref[...],
                preferred_element_type=jnp.float32) + fb2_ref[...]
    z = jnp.maximum(z, 0.0)

    # ---- fc3 (H//2 -> out_dim) ----
    if fw3t_ref.shape[0] == 1:
        # out_dim == 1: a 1-wide MXU pass is ~0.4% utilization -> VPU multiply + lane reduce.
        out = jnp.sum(z * fw3t_ref[...], axis=-1, keepdims=True) + fb3_ref[...]
    else:
        out = lax.dot_general(z, fw3t_ref[...], (((1,), (1,)), ((), ())),
                              preferred_element_type=jnp.float32) + fb3_ref[...]
    o_ref[...] = out.astype(o_ref.dtype)


# ------------------------------- wrapper ---------------------------------------

def cnn1d_forward(x, params, *, batch_block=8):
    """x: (B, 1, L) float32 -- same (N, C_in=1, L) convention as the PyTorch module."""
    w1, b1, w2, b2, (fw1, fb1, fw2, fb2, fw3, fb3) = params
    B, cin, L = x.shape
    assert cin == 1
    K = w1.shape[2]
    assert K == 3, "fused kernel written for kernel_size=3 (module default)"
    C1, C2 = w1.shape[0], w2.shape[0]
    T1, T2 = L // 3, (L // 3) // 3                 # MaxPool1d(3) truncation, same as PyTorch
    HID, H2, OUT = fw1.shape[1], fw2.shape[1], fw3.shape[1]
    assert fw1.shape[0] == C2 * T2, "fc1 input dim must equal channels[1] * (L//9)"

    # Batch block: multiple of 8 so all in-kernel shifts / pool slices stay sublane-tile aligned.
    Bb = max(8, int(batch_block))
    Bb = ((Bb + 7) // 8) * 8
    nB = -(-B // Bb)                               # ceil division
    Bpad = nB * Bb

    # Input prep (tiny, raw input only): zero-pad (conv padding + batch padding), regroup by
    # pool-offset+tap s in [0,5), and reorder rows to (block, t1, b_local) so each grid step sees a
    # contiguous, tile-aligned (T1*Bb) slab with batch fastest.
    xpad = jnp.pad(x[:, 0, :].astype(jnp.float32), ((0, Bpad - B), (1, 1)))     # (Bpad, L+2)
    xg = jnp.stack([xpad[:, s:s + 3 * T1:3] for s in range(5)], axis=0)          # (5, Bpad, T1)
    xg = xg.reshape(5, nB, Bb, T1).transpose(0, 1, 3, 2).reshape(5, nB * T1 * Bb, 1)

    # One-time weight prep: tap-major conv weights, bf16 MXU operands, fc1 split into T2 blocks of
    # (C2, H) matching torch's (c, t) flatten order, fc3 transposed for the VPU reduction.
    w1k = jnp.transpose(w1, (2, 1, 0)).astype(jnp.float32)                       # (3, 1, C1)
    w2k = jnp.transpose(w2, (2, 1, 0)).astype(jnp.bfloat16)                      # (3, C1, C2)
    fw1b = fw1.reshape(C2, T2, HID).transpose(1, 0, 2).astype(jnp.bfloat16)      # (T2, C2, H)
    fw2b = fw2.astype(jnp.bfloat16)                                              # (H, H2)
    fw3t = jnp.transpose(fw3).astype(jnp.float32)                                # (OUT, H2)

    R = T1 * Bb
    in_specs = [
        # per-block input stream
        pl.BlockSpec((5, R, 1), lambda i: (0, i, 0)),
        # weights/biases: full-array blocks with constant index maps -> DMA'd once, VMEM-resident
        pl.BlockSpec((3, 1, C1), lambda i: (0, 0, 0)),
        pl.BlockSpec((1, C1), lambda i: (0, 0)),
        pl.BlockSpec((3, C1, C2), lambda i: (0, 0, 0)),
        pl.BlockSpec((1, C2), lambda i: (0, 0)),
        pl.BlockSpec((T2, C2, HID), lambda i: (0, 0, 0)),
        pl.BlockSpec((1, HID), lambda i: (0, 0)),
        pl.BlockSpec((HID, H2), lambda i: (0, 0)),
        pl.BlockSpec((1, H2), lambda i: (0, 0)),
        pl.BlockSpec((OUT, H2), lambda i: (0, 0)),
        pl.BlockSpec((1, OUT), lambda i: (0, 0)),
    ]
    out_spec = pl.BlockSpec((Bb, OUT), lambda i: (i, 0))

    out = pl.pallas_call(
        functools.partial(cnn1d_fused_kernel, Bb=Bb, T1=T1, T2=T2),
        out_shape=jax.ShapeDtypeStruct((Bpad, OUT), jnp.float32),
        grid=(nB,),
        in_specs=in_specs,
        out_specs=out_spec,
        compiler_params=pltpu.CompilerParams(dimension_semantics=("parallel",)),
    )(xg, w1k, b1.reshape(1, C1), w2k, b2.reshape(1, C2),
      fw1b, fb1.reshape(1, HID), fw2b, fb2.reshape(1, H2),
      fw3t, fb3.reshape(1, OUT))
    return out[:B]


# --------------------------- pure-JAX reference --------------------------------

def cnn1d_reference(x, params):
    w1, b1, w2, b2, (fw1, fb1, fw2, fb2, fw3, fb3) = params
    dn = ('NCH', 'OIH', 'NCH')

    h = lax.conv_general_dilated(x, w1, window_strides=(1,), padding=[(1, 1)],
                                 dimension_numbers=dn) + b1[None, :, None]
    h = jnp.maximum(h, 0.0)
    h = lax.reduce_window(h, -jnp.inf, lax.max, (1, 1, 3), (1, 1, 3), 'VALID')

    h = lax.conv_general_dilated(h, w2, window_strides=(1,), padding=[(1, 1)],
                                 dimension_numbers=dn) + b2[None, :, None]
    h = jnp.maximum(h, 0.0)
    h = lax.reduce_window(h, -jnp.inf, lax.max, (1, 1, 3), (1, 1, 3), 'VALID')

    flat = h.reshape(h.shape[0], -1)
    z = jnp.maximum(flat @ fw1 + fb1, 0.0)
    z = jnp.maximum(z @ fw2 + fb2, 0.0)
    return z @ fw3 + fb3


# ----------------------------------- main --------------------------------------

if __name__ == "__main__":
    B, L = 10, 36                    # input_length = 36 -> cnn_out_dim = 32*(36//9) = 128
    C1, C2 = 32, 32                  # channels=[32, 32]
    HID, OUT = 128, 1                # hidden_dim=128, out_dim=1
    K = 3

    key = jax.random.PRNGKey(0)
    ks = jax.random.split(key, 11)

    # Deterministic synthetic parameters (shapes match the PyTorch module's __init__).
    w1 = 0.2 * jax.random.normal(ks[0], (C1, 1, K), jnp.float32)      # Conv1d(1, 32, 3)
    b1 = 0.1 * jax.random.normal(ks[1], (C1,), jnp.float32)
    w2 = 0.1 * jax.random.normal(ks[2], (C2, C1, K), jnp.float32)     # Conv1d(32, 32, 3)
    b2 = 0.1 * jax.random.normal(ks[3], (C2,), jnp.float32)

    cnn_out_dim = C2 * (L // 9)                                       # 128
    fw1 = 0.1 * jax.random.normal(ks[4], (cnn_out_dim, HID), jnp.float32)   # Linear(128, 128)
    fb1 = 0.1 * jax.random.normal(ks[5], (HID,), jnp.float32)
    fw2 = 0.1 * jax.random.normal(ks[6], (HID, HID // 2), jnp.float32)      # Linear(128, 64)
    fb2 = 0.1 * jax.random.normal(ks[7], (HID // 2,), jnp.float32)
    fw3 = 0.1 * jax.random.normal(ks[8], (HID // 2, OUT), jnp.float32)      # Linear(64, 1)
    fb3 = 0.1 * jax.random.normal(ks[9], (OUT,), jnp.float32)

    params = (w1, b1, w2, b2, (fw1, fb1, fw2, fb2, fw3, fb3))

    # B=10 with batch_block=8 -> grid=(2,) and exercises the batch-padding path.
    x = jax.random.normal(ks[10], (B, 1, L), jnp.float32)             # (N, 1, input_length)

    fwd = jax.jit(cnn1d_forward)
    out = jax.block_until_ready(fwd(x, params))
    assert out.shape == (B, OUT), out.shape

    ref = jax.block_until_ready(cnn1d_reference(x, params))
    # Tolerance accounts for bf16 MXU operands (f32 accumulation) inside the fused kernel.
    np.testing.assert_allclose(np.asarray(out), np.asarray(ref), rtol=2e-2, atol=2e-2)

    print("KERNEL_OK")
</pallas_src>

<mosaic_0001>
module attributes {stable_mosaic.version = 11 : i64} {
  func.func @cnn1d_fused_kernel(%arg0: i32, %arg1: memref<5x96x1xf32, #tpu.memory_space<vmem>>, %arg2: memref<3x1x32xf32, #tpu.memory_space<vmem>>, %arg3: memref<1x32xf32, #tpu.memory_space<vmem>>, %arg4: memref<3x32x32xbf16, #tpu.memory_space<vmem>>, %arg5: memref<1x32xf32, #tpu.memory_space<vmem>>, %arg6: memref<4x32x128xbf16, #tpu.memory_space<vmem>>, %arg7: memref<1x128xf32, #tpu.memory_space<vmem>>, %arg8: memref<128x64xbf16, #tpu.memory_space<vmem>>, %arg9: memref<1x64xf32, #tpu.memory_space<vmem>>, %arg10: memref<1x64xf32, #tpu.memory_space<vmem>>, %arg11: memref<1x1xf32, #tpu.memory_space<vmem>>, %arg12: memref<8x1xf32, #tpu.memory_space<vmem>>) attributes {dimension_semantics = [#tpu.dimension_semantics<parallel>], iteration_bounds = array<i64: 2>, scalar_prefetch = 0 : i64, scratch_operands = 0 : i64, tpu.core_type = #tpu.core_type<tc>, window_params = [{transform_indices = @transform_0, window_bounds = array<i64: 5, 96, 1>}, {pipeline_mode = #tpu.pipeline_mode<synchronous>, transform_indices = @transform_1, window_bounds = array<i64: 3, 1, 32>}, {pipeline_mode = #tpu.pipeline_mode<synchronous>, transform_indices = @transform_2, window_bounds = array<i64: 1, 32>}, {pipeline_mode = #tpu.pipeline_mode<synchronous>, transform_indices = @transform_3, window_bounds = array<i64: 3, 32, 32>}, {pipeline_mode = #tpu.pipeline_mode<synchronous>, transform_indices = @transform_4, window_bounds = array<i64: 1, 32>}, {pipeline_mode = #tpu.pipeline_mode<synchronous>, transform_indices = @transform_5, window_bounds = array<i64: 4, 32, 128>}, {pipeline_mode = #tpu.pipeline_mode<synchronous>, transform_indices = @transform_6, window_bounds = array<i64: 1, 128>}, {pipeline_mode = #tpu.pipeline_mode<synchronous>, transform_indices = @transform_7, window_bounds = array<i64: 128, 64>}, {pipeline_mode = #tpu.pipeline_mode<synchronous>, transform_indices = @transform_8, window_bounds = array<i64: 1, 64>}, {pipeline_mode = #tpu.pipeline_mode<synchronous>, transform_indices = @transform_9, window_bounds = array<i64: 1, 64>}, {pipeline_mode = #tpu.pipeline_mode<synchronous>, transform_indices = @transform_10, window_bounds = array<i64: 1, 1>}, {transform_indices = @transform_11, window_bounds = array<i64: 8, 1>}]} {
    %c0 = arith.constant 0 : index
    %c0_0 = arith.constant 0 : index
    %c0_1 = arith.constant 0 : index
    %0 = vector.load %arg1[%c0, %c0_0, %c0_1] : memref<5x96x1xf32, #tpu.memory_space<vmem>>, vector<1x96x1xf32>
    %1 = vector.shape_cast %0 : vector<1x96x1xf32> to vector<96x1xf32>
    %2 = vector.shape_cast %1 : vector<96x1xf32> to vector<96x1xf32>
    %3 = vector.broadcast %2 : vector<96x1xf32> to vector<96x32xf32>
    %c1 = arith.constant 1 : index
    %c0_2 = arith.constant 0 : index
    %c0_3 = arith.constant 0 : index
    %4 = vector.load %arg1[%c1, %c0_2, %c0_3] : memref<5x96x1xf32, #tpu.memory_space<vmem>>, vector<1x96x1xf32>
    %5 = vector.shape_cast %4 : vector<1x96x1xf32> to vector<96x1xf32>
    %6 = vector.shape_cast %5 : vector<96x1xf32> to vector<96x1xf32>
    %7 = vector.broadcast %6 : vector<96x1xf32> to vector<96x32xf32>
    %c2 = arith.constant 2 : index
    %c0_4 = arith.constant 0 : index
    %c0_5 = arith.constant 0 : index
    %8 = vector.load %arg1[%c2, %c0_4, %c0_5] : memref<5x96x1xf32, #tpu.memory_space<vmem>>, vector<1x96x1xf32>
    %9 = vector.shape_cast %8 : vector<1x96x1xf32> to vector<96x1xf32>
    %10 = vector.shape_cast %9 : vector<96x1xf32> to vector<96x1xf32>
    %11 = vector.broadcast %10 : vector<96x1xf32> to vector<96x32xf32>
    %c3 = arith.constant 3 : index
    %c0_6 = arith.constant 0 : index
    %c0_7 = arith.constant 0 : index
    %12 = vector.load %arg1[%c3, %c0_6, %c0_7] : memref<5x96x1xf32, #tpu.memory_space<vmem>>, vector<1x96x1xf32>
    %13 = vector.shape_cast %12 : vector<1x96x1xf32> to vector<96x1xf32>
    %14 = vector.shape_cast %13 : vector<96x1xf32> to vector<96x1xf32>
    %15 = vector.broadcast %14 : vector<96x1xf32> to vector<96x32xf32>
    %c4 = arith.constant 4 : index
    %c0_8 = arith.constant 0 : index
    %c0_9 = arith.constant 0 : index
    %16 = vector.load %arg1[%c4, %c0_8, %c0_9] : memref<5x96x1xf32, #tpu.memory_space<vmem>>, vector<1x96x1xf32>
    %17 = vector.shape_cast %16 : vector<1x96x1xf32> to vector<96x1xf32>
    %18 = vector.shape_cast %17 : vector<96x1xf32> to vector<96x1xf32>
    %19 = vector.broadcast %18 : vector<96x1xf32> to vector<96x32xf32>
    %c0_10 = arith.constant 0 : index
    %c0_11 = arith.constant 0 : index
    %c0_12 = arith.constant 0 : index
    %20 = vector.load %arg2[%c0_10, %c0_11, %c0_12] : memref<3x1x32xf32, #tpu.memory_space<vmem>>, vector<1x1x32xf32>
    %21 = vector.shape_cast %20 : vector<1x1x32xf32> to vector<1x32xf32>
    %22 = vector.shape_cast %21 : vector<1x32xf32> to vector<1x32xf32>
    %23 = vector.broadcast %22 : vector<1x32xf32> to vector<96x32xf32>
    %c1_13 = arith.constant 1 : index
    %c0_14 = arith.constant 0 : index
    %c0_15 = arith.constant 0 : index
    %24 = vector.load %arg2[%c1_13, %c0_14, %c0_15] : memref<3x1x32xf32, #tpu.memory_space<vmem>>, vector<1x1x32xf32>
    %25 = vector.shape_cast %24 : vector<1x1x32xf32> to vector<1x32xf32>
    %26 = vector.shape_cast %25 : vector<1x32xf32> to vector<1x32xf32>
    %27 = vector.broadcast %26 : vector<1x32xf32> to vector<96x32xf32>
    %c2_16 = arith.constant 2 : index
    %c0_17 = arith.constant 0 : index
    %c0_18 = arith.constant 0 : index
    %28 = vector.load %arg2[%c2_16, %c0_17, %c0_18] : memref<3x1x32xf32, #tpu.memory_space<vmem>>, vector<1x1x32xf32>
    %29 = vector.shape_cast %28 : vector<1x1x32xf32> to vector<1x32xf32>
    %30 = vector.shape_cast %29 : vector<1x32xf32> to vector<1x32xf32>
    %31 = vector.broadcast %30 : vector<1x32xf32> to vector<96x32xf32>
    %c0_19 = arith.constant 0 : index
    %c0_20 = arith.constant 0 : index
    %32 = vector.load %arg3[%c0_19, %c0_20] : memref<1x32xf32, #tpu.memory_space<vmem>>, vector<1x32xf32>
    %33 = vector.shape_cast %32 : vector<1x32xf32> to vector<1x32xf32>
    %34 = vector.broadcast %33 : vector<1x32xf32> to vector<96x32xf32>
    %cst = arith.constant 0.000000e+00 : f32
    %35 = vector.broadcast %cst : f32 to vector<96x32xf32>
    %36 = arith.mulf %3, %23 : vector<96x32xf32>
    %37 = arith.addf %34, %36 : vector<96x32xf32>
    %38 = arith.mulf %7, %27 : vector<96x32xf32>
    %39 = arith.addf %37, %38 : vector<96x32xf32>
    %40 = arith.mulf %11, %31 : vector<96x32xf32>
    %41 = arith.addf %39, %40 : vector<96x32xf32>
    %42 = arith.maximumf %35, %41 : vector<96x32xf32>
    %43 = arith.mulf %7, %23 : vector<96x32xf32>
    %44 = arith.addf %34, %43 : vector<96x32xf32>
    %45 = arith.mulf %11, %27 : vector<96x32xf32>
    %46 = arith.addf %44, %45 : vector<96x32xf32>
    %47 = arith.mulf %15, %31 : vector<96x32xf32>
    %48 = arith.addf %46, %47 : vector<96x32xf32>
    %49 = arith.maximumf %42, %48 : vector<96x32xf32>
    %50 = arith.mulf %11, %23 : vector<96x32xf32>
    %51 = arith.addf %34, %50 : vector<96x32xf32>
    %52 = arith.mulf %15, %27 : vector<96x32xf32>
    %53 = arith.addf %51, %52 : vector<96x32xf32>
    %54 = arith.mulf %19, %31 : vector<96x32xf32>
    %55 = arith.addf %53, %54 : vector<96x32xf32>
    %56 = arith.maximumf %49, %55 : vector<96x32xf32>
    %cst_21 = arith.constant 0.000000e+00 : f32
    %57 = vector.broadcast %cst_21 : f32 to vector<8x32xf32>
    %58 = vector.extract_strided_slice %56 {offsets = [0, 0], sizes = [88, 32], strides = [1, 1]} : vector<96x32xf32> to vector<88x32xf32>
    %59 = tpu.concatenate %57, %58 in 0 : vector<8x32xf32>, vector<88x32xf32> -> vector<96x32xf32>
    %60 = vector.extract_strided_slice %56 {offsets = [8, 0], sizes = [88, 32], strides = [1, 1]} : vector<96x32xf32> to vector<88x32xf32>
    %61 = tpu.concatenate %60, %57 in 0 : vector<88x32xf32>, vector<8x32xf32> -> vector<96x32xf32>
    %c0_22 = arith.constant 0 : index
    %c0_23 = arith.constant 0 : index
    %62 = vector.load %arg5[%c0_22, %c0_23] : memref<1x32xf32, #tpu.memory_space<vmem>>, vector<1x32xf32>
    %63 = vector.shape_cast %62 : vector<1x32xf32> to vector<1x32xf32>
    %64 = vector.broadcast %63 : vector<1x32xf32> to vector<96x32xf32>
    %65 = arith.truncf %59 : vector<96x32xf32> to vector<96x32xbf16>
    %c0_24 = arith.constant 0 : index
    %c0_25 = arith.constant 0 : index
    %c0_26 = arith.constant 0 : index
    %66 = vector.load %arg4[%c0_24, %c0_25, %c0_26] : memref<3x32x32xbf16, #tpu.memory_space<vmem>>, vector<1x32x32xbf16>
    %67 = vector.shape_cast %66 : vector<1x32x32xbf16> to vector<32x32xbf16>
    %cst_27 = arith.constant dense<0.000000e+00> : vector<96x32xf32>
    %68 = tpu.matmul %65, %67, %cst_27 {dimension_numbers = #tpu.dot_dimension_numbers<[1], [0], [0], [1], [0, 0, 1, 1], [], []>} : vector<96x32xbf16>, vector<32x32xbf16>, vector<96x32xf32> -> vector<96x32xf32>
    %69 = arith.addf %64, %68 : vector<96x32xf32>
    %70 = arith.truncf %56 : vector<96x32xf32> to vector<96x32xbf16>
    %c1_28 = arith.constant 1 : index
    %c0_29 = arith.constant 0 : index
    %c0_30 = arith.constant 0 : index
    %71 = vector.load %arg4[%c1_28, %c0_29, %c0_30] : memref<3x32x32xbf16, #tpu.memory_space<vmem>>, vector<1x32x32xbf16>
    %72 = vector.shape_cast %71 : vector<1x32x32xbf16> to vector<32x32xbf16>
    %cst_31 = arith.constant dense<0.000000e+00> : vector<96x32xf32>
    %73 = tpu.matmul %70, %72, %cst_31 {dimension_numbers = #tpu.dot_dimension_numbers<[1], [0], [0], [1], [0, 0, 1, 1], [], []>} : vector<96x32xbf16>, vector<32x32xbf16>, vector<96x32xf32> -> vector<96x32xf32>
    %74 = arith.addf %69, %73 : vector<96x32xf32>
    %75 = arith.truncf %61 : vector<96x32xf32> to vector<96x32xbf16>
    %c2_32 = arith.constant 2 : index
    %c0_33 = arith.constant 0 : index
    %c0_34 = arith.constant 0 : index
    %76 = vector.load %arg4[%c2_32, %c0_33, %c0_34] : memref<3x32x32xbf16, #tpu.memory_space<vmem>>, vector<1x32x32xbf16>
    %77 = vector.shape_cast %76 : vector<1x32x32xbf16> to vector<32x32xbf16>
    %cst_35 = arith.constant dense<0.000000e+00> : vector<96x32xf32>
    %78 = tpu.matmul %75, %77, %cst_35 {dimension_numbers = #tpu.dot_dimension_numbers<[1], [0], [0], [1], [0, 0, 1, 1], [], []>} : vector<96x32xbf16>, vector<32x32xbf16>, vector<96x32xf32> -> vector<96x32xf32>
    %79 = arith.addf %74, %78 : vector<96x32xf32>
    %c0_36 = arith.constant 0 : index
    %c0_37 = arith.constant 0 : index
    %80 = vector.load %arg7[%c0_36, %c0_37] : memref<1x128xf32, #tpu.memory_space<vmem>>, vector<1x128xf32>
    %81 = vector.shape_cast %80 : vector<1x128xf32> to vector<1x128xf32>
    %82 = vector.broadcast %81 : vector<1x128xf32> to vector<8x128xf32>
    %83 = vector.extract_strided_slice %79 {offsets = [0, 0], sizes = [8, 32], strides = [1, 1]} : vector<96x32xf32> to vector<8x32xf32>
    %84 = vector.extract_strided_slice %79 {offsets = [8, 0], sizes = [8, 32], strides = [1, 1]} : vector<96x32xf32> to vector<8x32xf32>
    %85 = arith.maximumf %83, %84 : vector<8x32xf32>
    %86 = vector.extract_strided_slice %79 {offsets = [16, 0], sizes = [8, 32], strides = [1, 1]} : vector<96x32xf32> to vector<8x32xf32>
    %cst_38 = arith.constant 0.000000e+00 : f32
    %87 = vector.broadcast %cst_38 : f32 to vector<8x32xf32>
    %88 = arith.maximumf %86, %87 : vector<8x32xf32>
    %89 = arith.maximumf %85, %88 : vector<8x32xf32>
    %90 = arith.truncf %89 : vector<8x32xf32> to vector<8x32xbf16>
    %c0_39 = arith.constant 0 : index
    %c0_40 = arith.constant 0 : index
    %c0_41 = arith.constant 0 : index
    %91 = vector.load %arg6[%c0_39, %c0_40, %c0_41] : memref<4x32x128xbf16, #tpu.memory_space<vmem>>, vector<1x32x128xbf16>
    %92 = vector.shape_cast %91 : vector<1x32x128xbf16> to vector<32x128xbf16>
    %cst_42 = arith.constant dense<0.000000e+00> : vector<8x128xf32>
    %93 = tpu.matmul %90, %92, %cst_42 {dimension_numbers = #tpu.dot_dimension_numbers<[1], [0], [0], [1], [0, 0, 1, 1], [], []>} : vector<8x32xbf16>, vector<32x128xbf16>, vector<8x128xf32> -> vector<8x128xf32>
    %94 = arith.addf %82, %93 : vector<8x128xf32>
    %95 = vector.extract_strided_slice %79 {offsets = [24, 0], sizes = [8, 32], strides = [1, 1]} : vector<96x32xf32> to vector<8x32xf32>
    %96 = vector.extract_strided_slice %79 {offsets = [32, 0], sizes = [8, 32], strides = [1, 1]} : vector<96x32xf32> to vector<8x32xf32>
    %97 = arith.maximumf %95, %96 : vector<8x32xf32>
    %98 = vector.extract_strided_slice %79 {offsets = [40, 0], sizes = [8, 32], strides = [1, 1]} : vector<96x32xf32> to vector<8x32xf32>
    %cst_43 = arith.constant 0.000000e+00 : f32
    %99 = vector.broadcast %cst_43 : f32 to vector<8x32xf32>
    %100 = arith.maximumf %98, %99 : vector<8x32xf32>
    %101 = arith.maximumf %97, %100 : vector<8x32xf32>
    %102 = arith.truncf %101 : vector<8x32xf32> to vector<8x32xbf16>
    %c1_44 = arith.constant 1 : index
    %c0_45 = arith.constant 0 : index
    %c0_46 = arith.constant 0 : index
    %103 = vector.load %arg6[%c1_44, %c0_45, %c0_46] : memref<4x32x128xbf16, #tpu.memory_space<vmem>>, vector<1x32x128xbf16>
    %104 = vector.shape_cast %103 : vector<1x32x128xbf16> to vector<32x128xbf16>
    %cst_47 = arith.constant dense<0.000000e+00> : vector<8x128xf32>
    %105 = tpu.matmul %102, %104, %cst_47 {dimension_numbers = #tpu.dot_dimension_numbers<[1], [0], [0], [1], [0, 0, 1, 1], [], []>} : vector<8x32xbf16>, vector<32x128xbf16>, vector<8x128xf32> -> vector<8x128xf32>
    %106 = arith.addf %94, %105 : vector<8x128xf32>
    %107 = vector.extract_strided_slice %79 {offsets = [48, 0], sizes = [8, 32], strides = [1, 1]} : vector<96x32xf32> to vector<8x32xf32>
    %108 = vector.extract_strided_slice %79 {offsets = [56, 0], sizes = [8, 32], strides = [1, 1]} : vector<96x32xf32> to vector<8x32xf32>
    %109 = arith.maximumf %107, %108 : vector<8x32xf32>
    %110 = vector.extract_strided_slice %79 {offsets = [64, 0], sizes = [8, 32], strides = [1, 1]} : vector<96x32xf32> to vector<8x32xf32>
    %cst_48 = arith.constant 0.000000e+00 : f32
    %111 = vector.broadcast %cst_48 : f32 to vector<8x32xf32>
    %112 = arith.maximumf %110, %111 : vector<8x32xf32>
    %113 = arith.maximumf %109, %112 : vector<8x32xf32>
    %114 = arith.truncf %113 : vector<8x32xf32> to vector<8x32xbf16>
    %c2_49 = arith.constant 2 : index
    %c0_50 = arith.constant 0 : index
    %c0_51 = arith.constant 0 : index
    %115 = vector.load %arg6[%c2_49, %c0_50, %c0_51] : memref<4x32x128xbf16, #tpu.memory_space<vmem>>, vector<1x32x128xbf16>
    %116 = vector.shape_cast %115 : vector<1x32x128xbf16> to vector<32x128xbf16>
    %cst_52 = arith.constant dense<0.000000e+00> : vector<8x128xf32>
    %117 = tpu.matmul %114, %116, %cst_52 {dimension_numbers = #tpu.dot_dimension_numbers<[1], [0], [0], [1], [0, 0, 1, 1], [], []>} : vector<8x32xbf16>, vector<32x128xbf16>, vector<8x128xf32> -> vector<8x128xf32>
    %118 = arith.addf %106, %117 : vector<8x128xf32>
    %119 = vector.extract_strided_slice %79 {offsets = [72, 0], sizes = [8, 32], strides = [1, 1]} : vector<96x32xf32> to vector<8x32xf32>
    %120 = vector.extract_strided_slice %79 {offsets = [80, 0], sizes = [8, 32], strides = [1, 1]} : vector<96x32xf32> to vector<8x32xf32>
    %121 = arith.maximumf %119, %120 : vector<8x32xf32>
    %122 = vector.extract_strided_slice %79 {offsets = [88, 0], sizes = [8, 32], strides = [1, 1]} : vector<96x32xf32> to vector<8x32xf32>
    %cst_53 = arith.constant 0.000000e+00 : f32
    %123 = vector.broadcast %cst_53 : f32 to vector<8x32xf32>
    %124 = arith.maximumf %122, %123 : vector<8x32xf32>
    %125 = arith.maximumf %121, %124 : vector<8x32xf32>
    %126 = arith.truncf %125 : vector<8x32xf32> to vector<8x32xbf16>
    %c3_54 = arith.constant 3 : index
    %c0_55 = arith.constant 0 : index
    %c0_56 = arith.constant 0 : index
    %127 = vector.load %arg6[%c3_54, %c0_55, %c0_56] : memref<4x32x128xbf16, #tpu.memory_space<vmem>>, vector<1x32x128xbf16>
    %128 = vector.shape_cast %127 : vector<1x32x128xbf16> to vector<32x128xbf16>
    %cst_57 = arith.constant dense<0.000000e+00> : vector<8x128xf32>
    %129 = tpu.matmul %126, %128, %cst_57 {dimension_numbers = #tpu.dot_dimension_numbers<[1], [0], [0], [1], [0, 0, 1, 1], [], []>} : vector<8x32xbf16>, vector<32x128xbf16>, vector<8x128xf32> -> vector<8x128xf32>
    %130 = arith.addf %118, %129 : vector<8x128xf32>
    %cst_58 = arith.constant 0.000000e+00 : f32
    %131 = vector.broadcast %cst_58 : f32 to vector<8x128xf32>
    %132 = arith.maximumf %130, %131 : vector<8x128xf32>
    %133 = arith.truncf %132 : vector<8x128xf32> to vector<8x128xbf16>
    %c0_59 = arith.constant 0 : index
    %c0_60 = arith.constant 0 : index
    %134 = vector.load %arg8[%c0_59, %c0_60] : memref<128x64xbf16, #tpu.memory_space<vmem>>, vector<128x64xbf16>
    %cst_61 = arith.constant dense<0.000000e+00> : vector<8x64xf32>
    %135 = tpu.matmul %133, %134, %cst_61 {dimension_numbers = #tpu.dot_dimension_numbers<[1], [0], [0], [1], [0, 0, 1, 1], [], []>} : vector<8x128xbf16>, vector<128x64xbf16>, vector<8x64xf32> -> vector<8x64xf32>
    %c0_62 = arith.constant 0 : index
    %c0_63 = arith.constant 0 : index
    %136 = vector.load %arg9[%c0_62, %c0_63] : memref<1x64xf32, #tpu.memory_space<vmem>>, vector<1x64xf32>
    %137 = vector.broadcast %136 : vector<1x64xf32> to vector<8x64xf32>
    %138 = arith.addf %135, %137 : vector<8x64xf32>
    %cst_64 = arith.constant 0.000000e+00 : f32
    %139 = vector.broadcast %cst_64 : f32 to vector<8x64xf32>
    %140 = arith.maximumf %138, %139 : vector<8x64xf32>
    %c0_65 = arith.constant 0 : index
    %c0_66 = arith.constant 0 : index
    %141 = vector.load %arg10[%c0_65, %c0_66] : memref<1x64xf32, #tpu.memory_space<vmem>>, vector<1x64xf32>
    %142 = vector.broadcast %141 : vector<1x64xf32> to vector<8x64xf32>
    %143 = arith.mulf %140, %142 : vector<8x64xf32>
    %cst_67 = arith.constant dense<0.000000e+00> : vector<8xf32>
    %144 = vector.multi_reduction <add>, %143, %cst_67 [1] : vector<8x64xf32> to vector<8xf32>
    %145 = vector.shape_cast %144 : vector<8xf32> to vector<8x1xf32>
    %c0_68 = arith.constant 0 : index
    %c0_69 = arith.constant 0 : index
    %146 = vector.load %arg11[%c0_68, %c0_69] : memref<1x1xf32, #tpu.memory_space<vmem>>, vector<1x1xf32>
    %147 = vector.broadcast %146 : vector<1x1xf32> to vector<8x1xf32>
    %148 = arith.addf %145, %147 : vector<8x1xf32>
    %c0_70 = arith.constant 0 : index
    %c0_71 = arith.constant 0 : index
    %149 = vector.load %arg12[%c0_70, %c0_71] : memref<8x1xf32, #tpu.memory_space<vmem>>, vector<8x1xf32>
    tpu.vector_store %arg12[%c0_70, %c0_71], %148 {strides = array<i32>} : memref<8x1xf32, #tpu.memory_space<vmem>>, vector<8x1xf32>,
    return
  }
  func.func @transform_0(%arg0: i32) -> (i32, i32, i32) {
    %c0_i32 = arith.constant 0 : i32
    %c0_i32_0 = arith.constant 0 : i32
    %c0_i32_1 = arith.constant 0 : i32
    return %c0_i32, %arg0, %c0_i32_0 : i32, i32, i32
  }
  func.func @transform_1(%arg0: i32) -> (i32, i32, i32) {
    %c0_i32 = arith.constant 0 : i32
    %c0_i32_0 = arith.constant 0 : i32
    %c0_i32_1 = arith.constant 0 : i32
    %c0_i32_2 = arith.constant 0 : i32
    return %c0_i32, %c0_i32_0, %c0_i32_1 : i32, i32, i32
  }
  func.func @transform_2(%arg0: i32) -> (i32, i32) {
    %c0_i32 = arith.constant 0 : i32
    %c0_i32_0 = arith.constant 0 : i32
    %c0_i32_1 = arith.constant 0 : i32
    return %c0_i32, %c0_i32_0 : i32, i32
  }
  func.func @transform_3(%arg0: i32) -> (i32, i32, i32) {
    %c0_i32 = arith.constant 0 : i32
    %c0_i32_0 = arith.constant 0 : i32
    %c0_i32_1 = arith.constant 0 : i32
    %c0_i32_2 = arith.constant 0 : i32
    return %c0_i32, %c0_i32_0, %c0_i32_1 : i32, i32, i32
  }
  func.func @transform_4(%arg0: i32) -> (i32, i32) {
    %c0_i32 = arith.constant 0 : i32
    %c0_i32_0 = arith.constant 0 : i32
    %c0_i32_1 = arith.constant 0 : i32
    return %c0_i32, %c0_i32_0 : i32, i32
  }
  func.func @transform_5(%arg0: i32) -> (i32, i32, i32) {
    %c0_i32 = arith.constant 0 : i32
    %c0_i32_0 = arith.constant 0 : i32
    %c0_i32_1 = arith.constant 0 : i32
    %c0_i32_2 = arith.constant 0 : i32
    return %c0_i32, %c0_i32_0, %c0_i32_1 : i32, i32, i32
  }
  func.func @transform_6(%arg0: i32) -> (i32, i32) {
    %c0_i32 = arith.constant 0 : i32
    %c0_i32_0 = arith.constant 0 : i32
    %c0_i32_1 = arith.constant 0 : i32
    return %c0_i32, %c0_i32_0 : i32, i32
  }
  func.func @transform_7(%arg0: i32) -> (i32, i32) {
    %c0_i32 = arith.constant 0 : i32
    %c0_i32_0 = arith.constant 0 : i32
    %c0_i32_1 = arith.constant 0 : i32
    return %c0_i32, %c0_i32_0 : i32, i32
  }
  func.func @transform_8(%arg0: i32) -> (i32, i32) {
    %c0_i32 = arith.constant 0 : i32
    %c0_i32_0 = arith.constant 0 : i32
    %c0_i32_1 = arith.constant 0 : i32
    return %c0_i32, %c0_i32_0 : i32, i32
  }
  func.func @transform_9(%arg0: i32) -> (i32, i32) {
    %c0_i32 = arith.constant 0 : i32
    %c0_i32_0 = arith.constant 0 : i32
    %c0_i32_1 = arith.constant 0 : i32
    return %c0_i32, %c0_i32_0 : i32, i32
  }
  func.func @transform_10(%arg0: i32) -> (i32, i32) {
    %c0_i32 = arith.constant 0 : i32
    %c0_i32_0 = arith.constant 0 : i32
    %c0_i32_1 = arith.constant 0 : i32
    return %c0_i32, %c0_i32_0 : i32, i32
  }
  func.func @transform_11(%arg0: i32) -> (i32, i32) {
    %c0_i32 = arith.constant 0 : i32
    %c0_i32_0 = arith.constant 0 : i32
    return %arg0, %c0_i32 : i32, i32
  }
}

</mosaic_0001>

<bundles_post_ra>
// kernel: cnn1d_forward.1
= control target key start
LH: loop header
LB: loop body
LE: loop exit
PB: predicated region body
PF: predicated region fallthrough
CT: control target
= control target key end

     0   :  { %s3190_s0 = inlined_call_operand.vmem [shape: f32[5,192,1], index: 0, kind: input, shape index: {}]   ;;  %s3191_s1 = inlined_call_operand.vmem [shape: f32[3,1,32], index: 1, kind: input, shape index: {}]   ;;  %s3192_s2 = inlined_call_operand.vmem [shape: f32[1,32], index: 2, kind: input, shape index: {}]   ;;  %s3193_s3 = inlined_call_operand.vmem [shape: bf16[3,32,32], index: 3, kind: input, shape index: {}]   ;;  %s3194_s4 = inlined_call_operand.vmem [shape: f32[1,32], index: 4, kind: input, shape index: {}]   ;;  %s3195_s5 = inlined_call_operand.vmem [shape: bf16[4,32,128], index: 5, kind: input, shape index: {}]   ;;  %s3196_s6 = inlined_call_operand.vmem [shape: f32[1,128], index: 6, kind: input, shape index: {}]   ;;  %s3197_s7 = inlined_call_operand.vmem [shape: bf16[128,64], index: 7, kind: input, shape index: {}]   ;;  %s3198_s8 = inlined_call_operand.vmem [shape: f32[1,64], index: 8, kind: input, shape index: {}]   ;;  %s3199_s9 = inlined_call_operand.vmem [shape: f32[1,64], index: 9, kind: input, shape index: {}]   ;;  %s3200_s10 = inlined_call_operand.<no memory space> [shape: f32[1,1], index: 10, kind: input, shape index: {}]   ;;  %s3201_s11 = inlined_call_operand.vmem [shape: f32[16,1], index: 11, kind: output, shape index: {}]  }
   0x1   :  { %v16_v0 = vstv %s3200_s10 }
   0x2   :  { %17 = vst [vmem:[#allocation2] sm:$0x1] %v16_v0 }
   0x3   :  { %s2582_s19 = smov 0   ;;  %s2584_s20 = smov 0  }
   0x4   :  { %s2586_s21 = smov 0  }
   0x5 LB: > { %s2157_s10 = sadd.s32 4294967295, %s2514_s21   ;;  %s2599_s22 = sadd.s32 1, %s2514_s21   ;;  %s2514_s21 = sphi %s2586_s21, %s3204_s21   ;;  %s2510_s20 = sphi %s2584_s20, %s3203_s20   ;;  %s2506_s19 = sphi %s2582_s19, %s3202_s19  }
   0x6   : > { %s27_s23 = ssub.s32 %s2514_s21, %s2599_s22  ;;  %s30_s24 = sadd.s32 1, %s2510_s20 }
   0x7   : > { %p28_p0 = scmp.eq.s32.totalorder %s27_s23, 0  ;;  %p37_p1 = scmp.ne.s32.totalorder %s2510_s20, %s2506_s19 }
   0x8   : > { %p38_p2 = scmp.eq.s32.totalorder %s2514_s21, 0  ;;  %p2160_p4 = scmp.ge.s32.totalorder %s2514_s21, 2 }
   0x9   : > { %s2608_s25 = scalar_select %p28_p0, %s2510_s20, %s30_s24  }
   0xa   : > { %p39_p3 = por %p38_p2, %p37_p1  ;;  %329 = sbr.rel (%p2160_p4) target bundleno = 50 (0x32), region = 56 }
   0xf   : > { %332 = sbr.rel (!%p39_p3) target bundleno = 50 (0x32), region = 60  ;;  %s334_s26 = sand.u32 (%p39_p3), 1, %s2510_s20  }
  0x10   : > { %s2289_s27 = smul.u32 (%p39_p3), 96, %s2514_s21 }
  0x11   : > { %s2439_s28 = smul.u32 (%p39_p3), 480, %s334_s26 }
  0x12   : > { %s2616_s12 = scalar_lea.vmem (%p39_p3), %s3190_s0, %s2289_s27 }
  0x13   : > { %v486_v1 = vld [vmem:[%s2616_s12] sm:$0xff] (%p39_p3)  ;;  %v488_v2 = vld [vmem:[%s2616_s12 + $0x8] sm:$0xff] (%p39_p3)  ;;  %v490_v3 = vld [vmem:[%s2616_s12 + $0x10] sm:$0xff] (%p39_p3)  ;;  %s2621_s13 = scalar_lea.vmem (%p39_p3), [#allocation3], %s2439_s28 }
  0x14   : > { %487 = vst [vmem:[%s2621_s13] sm:$0xff] %v486_v1  ;;  %489 = vst [vmem:[%s2621_s13 + $0x8] sm:$0xff] %v488_v2  ;;  %v492_v4 = vld [vmem:[%s2616_s12 + $0x18] sm:$0xff]  ;;  %v494_v5 = vld [vmem:[%s2616_s12 + $0x20] sm:$0xff] }
  0x15   : > { %491 = vst [vmem:[%s2621_s13 + $0x10] sm:$0xff] %v490_v3  ;;  %v496_v6 = vld [vmem:[%s2616_s12 + $0x28] sm:$0xff]  ;;  %493 = vst [vmem:[%s2621_s13 + $0x18] sm:$0xff] %v492_v4  ;;  %v498_v7 = vld [vmem:[%s2616_s12 + $0x30] sm:$0xff] }
  0x16   : > { %495 = vst [vmem:[%s2621_s13 + $0x20] sm:$0xff] %v494_v5  ;;  %497 = vst [vmem:[%s2621_s13 + $0x28] sm:$0xff] %v496_v6  ;;  %v500_v8 = vld [vmem:[%s2616_s12 + $0x38] sm:$0xff]  ;;  %v502_v9 = vld [vmem:[%s2616_s12 + $0x40] sm:$0xff] }
  0x17   : > { %499 = vst [vmem:[%s2621_s13 + $0x30] sm:$0xff] %v498_v7  ;;  %501 = vst [vmem:[%s2621_s13 + $0x38] sm:$0xff] %v500_v8  ;;  %v504_v10 = vld [vmem:[%s2616_s12 + $0x48] sm:$0xff]  ;;  %v506_v11 = vld [vmem:[%s2616_s12 + $0x50] sm:$0xff] }
  0x18   : > { %503 = vst [vmem:[%s2621_s13 + $0x40] sm:$0xff] %v502_v9  ;;  %v508_v12 = vld [vmem:[%s2616_s12 + $0x58] sm:$0xff]  ;;  %505 = vst [vmem:[%s2621_s13 + $0x48] sm:$0xff] %v504_v10  ;;  %v510_v13 = vld [vmem:[%s2616_s12 + $0xc0] sm:$0xff] }
  0x19   : > { %507 = vst [vmem:[%s2621_s13 + $0x50] sm:$0xff] %v506_v11  ;;  %509 = vst [vmem:[%s2621_s13 + $0x58] sm:$0xff] %v508_v12  ;;  %v512_v14 = vld [vmem:[%s2616_s12 + $0xc8] sm:$0xff]  ;;  %v514_v15 = vld [vmem:[%s2616_s12 + $0xd0] sm:$0xff] }
  0x1a   : > { %511 = vst [vmem:[%s2621_s13 + $0x60] sm:$0xff] %v510_v13  ;;  %513 = vst [vmem:[%s2621_s13 + $0x68] sm:$0xff] %v512_v14  ;;  %v516_v16 = vld [vmem:[%s2616_s12 + $0xd8] sm:$0xff]  ;;  %v518_v17 = vld [vmem:[%s2616_s12 + $0xe0] sm:$0xff] }
  0x1b   : > { %515 = vst [vmem:[%s2621_s13 + $0x70] sm:$0xff] %v514_v15  ;;  %v520_v18 = vld [vmem:[%s2616_s12 + $0xe8] sm:$0xff]  ;;  %517 = vst [vmem:[%s2621_s13 + $0x78] sm:$0xff] %v516_v16  ;;  %v522_v19 = vld [vmem:[%s2616_s12 + $0xf0] sm:$0xff] }
  0x1c   : > { %519 = vst [vmem:[%s2621_s13 + $0x80] sm:$0xff] %v518_v17  ;;  %521 = vst [vmem:[%s2621_s13 + $0x88] sm:$0xff] %v520_v18  ;;  %v524_v20 = vld [vmem:[%s2616_s12 + $0xf8] sm:$0xff]  ;;  %v526_v21 = vld [vmem:[%s2616_s12 + $0x100] sm:$0xff] }
  0x1d   : > { %523 = vst [vmem:[%s2621_s13 + $0x90] sm:$0xff] %v522_v19  ;;  %525 = vst [vmem:[%s2621_s13 + $0x98] sm:$0xff] %v524_v20  ;;  %v528_v22 = vld [vmem:[%s2616_s12 + $0x108] sm:$0xff]  ;;  %v530_v23 = vld [vmem:[%s2616_s12 + $0x110] sm:$0xff] }
  0x1e   : > { %527 = vst [vmem:[%s2621_s13 + $0xa0] sm:$0xff] %v526_v21  ;;  %v532_v24 = vld [vmem:[%s2616_s12 + $0x118] sm:$0xff]  ;;  %529 = vst [vmem:[%s2621_s13 + $0xa8] sm:$0xff] %v528_v22  ;;  %v534_v25 = vld [vmem:[%s2616_s12 + $0x180] sm:$0xff] }
  0x1f   : > { %531 = vst [vmem:[%s2621_s13 + $0xb0] sm:$0xff] %v530_v23  ;;  %533 = vst [vmem:[%s2621_s13 + $0xb8] sm:$0xff] %v532_v24  ;;  %v536_v26 = vld [vmem:[%s2616_s12 + $0x188] sm:$0xff]  ;;  %v538_v27 = vld [vmem:[%s2616_s12 + $0x190] sm:$0xff] }
  0x20   : > { %535 = vst [vmem:[%s2621_s13 + $0xc0] sm:$0xff] %v534_v25  ;;  %537 = vst [vmem:[%s2621_s13 + $0xc8] sm:$0xff] %v536_v26  ;;  %v540_v28 = vld [vmem:[%s2616_s12 + $0x198] sm:$0xff]  ;;  %v542_v29 = vld [vmem:[%s2616_s12 + $0x1a0] sm:$0xff] }
  0x21   : > { %539 = vst [vmem:[%s2621_s13 + $0xd0] sm:$0xff] %v538_v27  ;;  %v544_v30 = vld [vmem:[%s2616_s12 + $0x1a8] sm:$0xff]  ;;  %541 = vst [vmem:[%s2621_s13 + $0xd8] sm:$0xff] %v540_v28  ;;  %v546_v31 = vld [vmem:[%s2616_s12 + $0x1b0] sm:$0xff] }
  0x22   : > { %543 = vst [vmem:[%s2621_s13 + $0xe0] sm:$0xff] %v542_v29  ;;  %545 = vst [vmem:[%s2621_s13 + $0xe8] sm:$0xff] %v544_v30  ;;  %v548_v32 = vld [vmem:[%s2616_s12 + $0x1b8] sm:$0xff]  ;;  %v550_v33 = vld [vmem:[%s2616_s12 + $0x1c0] sm:$0xff] }
  0x23   : > { %547 = vst [vmem:[%s2621_s13 + $0xf0] sm:$0xff] %v546_v31  ;;  %549 = vst [vmem:[%s2621_s13 + $0xf8] sm:$0xff] %v548_v32  ;;  %v552_v34 = vld [vmem:[%s2616_s12 + $0x1c8] sm:$0xff]  ;;  %v554_v35 = vld [vmem:[%s2616_s12 + $0x1d0] sm:$0xff] }
  0x24   : > { %551 = vst [vmem:[%s2621_s13 + $0x100] sm:$0xff] %v550_v33  ;;  %v556_v36 = vld [vmem:[%s2616_s12 + $0x1d8] sm:$0xff]  ;;  %553 = vst [vmem:[%s2621_s13 + $0x108] sm:$0xff] %v552_v34  ;;  %v558_v37 = vld [vmem:[%s2616_s12 + $0x240] sm:$0xff] }
  0x25   : > { %555 = vst [vmem:[%s2621_s13 + $0x110] sm:$0xff] %v554_v35  ;;  %557 = vst [vmem:[%s2621_s13 + $0x118] sm:$0xff] %v556_v36  ;;  %v560_v38 = vld [vmem:[%s2616_s12 + $0x248] sm:$0xff]  ;;  %v562_v39 = vld [vmem:[%s2616_s12 + $0x250] sm:$0xff] }
  0x26   : > { %559 = vst [vmem:[%s2621_s13 + $0x120] sm:$0xff] %v558_v37  ;;  %561 = vst [vmem:[%s2621_s13 + $0x128] sm:$0xff] %v560_v38  ;;  %v564_v40 = vld [vmem:[%s2616_s12 + $0x258] sm:$0xff]  ;;  %v566_v41 = vld [vmem:[%s2616_s12 + $0x260] sm:$0xff] }
  0x27   : > { %563 = vst [vmem:[%s2621_s13 + $0x130] sm:$0xff] %v562_v39  ;;  %v568_v42 = vld [vmem:[%s2616_s12 + $0x268] sm:$0xff]  ;;  %565 = vst [vmem:[%s2621_s13 + $0x138] sm:$0xff] %v564_v40  ;;  %v570_v43 = vld [vmem:[%s2616_s12 + $0x270] sm:$0xff] }
  0x28   : > { %567 = vst [vmem:[%s2621_s13 + $0x140] sm:$0xff] %v566_v41  ;;  %569 = vst [vmem:[%s2621_s13 + $0x148] sm:$0xff] %v568_v42  ;;  %v572_v44 = vld [vmem:[%s2616_s12 + $0x278] sm:$0xff]  ;;  %v574_v45 = vld [vmem:[%s2616_s12 + $0x280] sm:$0xff] }
  0x29   : > { %571 = vst [vmem:[%s2621_s13 + $0x150] sm:$0xff] %v570_v43  ;;  %573 = vst [vmem:[%s2621_s13 + $0x158] sm:$0xff] %v572_v44  ;;  %v576_v46 = vld [vmem:[%s2616_s12 + $0x288] sm:$0xff]  ;;  %v578_v47 = vld [vmem:[%s2616_s12 + $0x290] sm:$0xff] }
  0x2a   : > { %575 = vst [vmem:[%s2621_s13 + $0x160] sm:$0xff] %v574_v45  ;;  %v580_v48 = vld [vmem:[%s2616_s12 + $0x298] sm:$0xff]  ;;  %577 = vst [vmem:[%s2621_s13 + $0x168] sm:$0xff] %v576_v46  ;;  %v582_v49 = vld [vmem:[%s2616_s12 + $0x300] sm:$0xff] }
  0x2b   : > { %579 = vst [vmem:[%s2621_s13 + $0x170] sm:$0xff] %v578_v47  ;;  %581 = vst [vmem:[%s2621_s13 + $0x178] sm:$0xff] %v580_v48  ;;  %v584_v50 = vld [vmem:[%s2616_s12 + $0x308] sm:$0xff]  ;;  %v586_v51 = vld [vmem:[%s2616_s12 + $0x310] sm:$0xff] }
  0x2c   : > { %583 = vst [vmem:[%s2621_s13 + $0x180] sm:$0xff] %v582_v49  ;;  %585 = vst [vmem:[%s2621_s13 + $0x188] sm:$0xff] %v584_v50  ;;  %v588_v52 = vld [vmem:[%s2616_s12 + $0x318] sm:$0xff]  ;;  %v590_v53 = vld [vmem:[%s2616_s12 + $0x320] sm:$0xff] }
  0x2d   : > { %587 = vst [vmem:[%s2621_s13 + $0x190] sm:$0xff] %v586_v51  ;;  %v592_v54 = vld [vmem:[%s2616_s12 + $0x328] sm:$0xff]  ;;  %589 = vst [vmem:[%s2621_s13 + $0x198] sm:$0xff] %v588_v52  ;;  %v594_v55 = vld [vmem:[%s2616_s12 + $0x330] sm:$0xff] }
  0x2e   : > { %591 = vst [vmem:[%s2621_s13 + $0x1a0] sm:$0xff] %v590_v53  ;;  %593 = vst [vmem:[%s2621_s13 + $0x1a8] sm:$0xff] %v592_v54  ;;  %v596_v56 = vld [vmem:[%s2616_s12 + $0x338] sm:$0xff]  ;;  %v598_v57 = vld [vmem:[%s2616_s12 + $0x340] sm:$0xff] }
  0x2f   : > { %595 = vst [vmem:[%s2621_s13 + $0x1b0] sm:$0xff] %v594_v55  ;;  %597 = vst [vmem:[%s2621_s13 + $0x1b8] sm:$0xff] %v596_v56  ;;  %v600_v58 = vld [vmem:[%s2616_s12 + $0x348] sm:$0xff]  ;;  %v602_v59 = vld [vmem:[%s2616_s12 + $0x350] sm:$0xff] }
  0x30   : > { %599 = vst [vmem:[%s2621_s13 + $0x1c0] sm:$0xff] %v598_v57  ;;  %v604_v60 = vld [vmem:[%s2616_s12 + $0x358] sm:$0xff]  ;;  %601 = vst [vmem:[%s2621_s13 + $0x1c8] sm:$0xff] %v600_v58 }
  0x31   : > { %603 = vst [vmem:[%s2621_s13 + $0x1d0] sm:$0xff] %v602_v59  ;;  %605 = vst [vmem:[%s2621_s13 + $0x1d8] sm:$0xff] %v604_v60 }
  0x32 PF: > { %p2162_p5 = scmp.ge.s32.totalorder %s2514_s21, 1  ;;  %p610_p6 = scmp.lt.s32.totalorder %s2514_s21, 3 }
  0x34   : > { %p611_p7 = pnand %p2162_p5, %p610_p6 }
  0x35   : > { %s617_s14 = sand.u32 (!%p611_p7), 1, %s2506_s19   ;;  %p656_p8 = scmp.lt.s32.totalorder (!%p611_p7), %s2157_s10, 1 }
  0x36   : > { %614 = sbr.rel (%p611_p7) target bundleno = 1090 (0x442), region = 98 }
  0x37   : > { %s2440_s15 = smul.u32 (!%p611_p7), 480, %s617_s14 }
  0x39   : > { %s2743_s16 = scalar_lea.vmem (!%p611_p7), [#allocation3], %s2440_s15 }
  0x3b   : > { %v2516_v61 = vmov 0   ;;  %v663_v62 = vld [vmem:[%s2743_s16 + $0x10] sm:$0xff]  ;;  %v661_v63 = vld [vmem:[%s2743_s16] sm:$0xff]  ;;  %v662_v1 = vld [vmem:[%s2743_s16 + $0x8] sm:$0xff]  ;;  %vm1336_vm0 = vcmask 261120   ;;  %vm2518_vm1 = vmmov 0  }
  0x3c   : > { %2469 = vset.pattern.permute.xlu1 %v2516_v61  ;;  %2468 = vset.pattern.permute.xlu0 %v2516_v61  ;;  %v2164_v0 = vld [vmem:[%s2743_s16 + $0x60] sm:$0xff]  ;;  %v2166_v2 = vld [vmem:[%s2743_s16 + $0x70] sm:$0xff]  ;;  %v2165_v3 = vld [vmem:[%s2743_s16 + $0x68] sm:$0xff]  ;;  %vm2084_vm2 = vcmask 523264   ;;  %s3206_s10 = smov (!%p656_p8, %s2157_s10), 1  ;;  %vm2096_vm3 = vcmask 7168  }
  0x3d   : > { %685 = vperm.xlu1 %2469, %v663_v62   ;;  %675 = vperm.xlu0 %2468, %v661_v63   ;;  %v2177_v4 = vld [vmem:[%s2743_s16 + $0xc8] sm:$0xff]  ;;  %v2176_v5 = vld [vmem:[%s2743_s16 + $0xc0] sm:$0xff]  ;;  %v2178_v7 = vld [vmem:[%s2743_s16 + $0xd0] sm:$0xff]  ;;  %v2517_v62 = vmov 0.0   ;;  %s2163_s17 = sshll.u32 %s3206_s10, 3 }
  0x3e   : > { %v2188_v6 = vld [vmem:[%s2743_s16 + $0x120] sm:$0xff]  ;;  %v2190_v8 = vld [vmem:[%s2743_s16 + $0x130] sm:$0xff]  ;;  %v2189_v9 = vld [vmem:[%s2743_s16 + $0x128] sm:$0xff]  ;;  %s659_s23 = scalar_lea.vmem %s3201_s11, %s2163_s17 }
  0x3f   : > { %v665_v10 = vld [vmem:[%s2743_s16 + $0x20] sm:$0xff]  ;;  %v664_v11 = vld [vmem:[%s2743_s16 + $0x18] sm:$0xff]  ;;  %v666_v12 = vld [vmem:[%s2743_s16 + $0x28] sm:$0xff] }
  0x40   : > { %v2200_v13 = vld [vmem:[%s2743_s16 + $0x180] sm:$0xff]  ;;  %v2201_v14 = vld [vmem:[%s2743_s16 + $0x188] sm:$0xff]  ;;  %v667_v15 = vld [vmem:[%s2743_s16 + $0x30] sm:$0xff] }
  0x41   : > { %748 = vperm.xlu1 %2469, %v2164_v0   ;;  %680 = vperm.xlu0 %2468, %v662_v1   ;;  %v2470_v16 = vld [vmem:[%s3193_s3 + $0x8] sm:$0xff]   ;;  %v2167_v17 = vld [vmem:[%s2743_s16 + $0x78] sm:$0xff]  ;;  %v2202_v18 = vld [vmem:[%s2743_s16 + $0x190] sm:$0xff] }
  0x42   : > { %2335 = vmatprep.subr.bf16.mxu0 %v2470_v16  ;;  %v2471_v19 = vld [vmem:[%s3193_s3] sm:$0xff]   ;;  %v2169_v20 = vld [vmem:[%s2743_s16 + $0x88] sm:$0xff]  ;;  %v2170_v23 = vld [vmem:[%s2743_s16 + $0x90] sm:$0xff] }
  0x43   : > { %2336 = vmatpush3.bf16.msra.mxu0 %v2470_v16  ;;  %v2168_v21 = vld [vmem:[%s2743_s16 + $0x80] sm:$0xff]  ;;  %v2179_v22 = vld [vmem:[%s2743_s16 + $0xd8] sm:$0xff]  ;;  %v2181_v24 = vld [vmem:[%s2743_s16 + $0xe8] sm:$0xff] }
  0x44   : > { %2337 = vmatprep.subr.bf16.mxu0 %v2471_v19  ;;  %v2180_v25 = vld [vmem:[%s2743_s16 + $0xe0] sm:$0xff]  ;;  %v2191_v26 = vld [vmem:[%s2743_s16 + $0x138] sm:$0xff]  ;;  %v2182_v27 = vld [vmem:[%s2743_s16 + $0xf0] sm:$0xff] }
  0x45   : > { %758 = vperm.xlu1 %2469, %v2166_v2   ;;  %753 = vperm.xlu0 %2468, %v2165_v3   ;;  %v2193_v28 = vld [vmem:[%s2743_s16 + $0x148] sm:$0xff]  ;;  %v2192_v29 = vld [vmem:[%s2743_s16 + $0x140] sm:$0xff]  ;;  %v668_v30 = vld [vmem:[%s2743_s16 + $0x38] sm:$0xff] }
  0x46   : > { %v2194_v31 = vld [vmem:[%s2743_s16 + $0x150] sm:$0xff]  ;;  %v2203_v32 = vld [vmem:[%s2743_s16 + $0x198] sm:$0xff]  ;;  %v669_v33 = vld [vmem:[%s2743_s16 + $0x40] sm:$0xff] }
  0x47   : > { %2338 = vmatpush3.bf16.msra.mxu0 %v2471_v19  ;;  %v670_v34 = vld [vmem:[%s2743_s16 + $0x48] sm:$0xff]  ;;  %v2204_v35 = vld [vmem:[%s2743_s16 + $0x1a0] sm:$0xff]  ;;  %v671_v37 = vld [vmem:[%s2743_s16 + $0x50] sm:$0xff] }
  0x48   : > { %v2205_v36 = vld [vmem:[%s2743_s16 + $0x1a8] sm:$0xff]  ;;  %v2171_v38 = vld [vmem:[%s2743_s16 + $0x98] sm:$0xff]  ;;  %v2206_v39 = vld [vmem:[%s2743_s16 + $0x1b0] sm:$0xff] }
  0x49   : > { %826 = vperm.xlu1 %2469, %v2177_v4   ;;  %821 = vperm.xlu0 %2468, %v2176_v5   ;;  %v2173_v40 = vld [vmem:[%s2743_s16 + $0xa8] sm:$0xff]  ;;  %v2172_v41 = vld [vmem:[%s2743_s16 + $0xa0] sm:$0xff]  ;;  %v2183_v42 = vld [vmem:[%s2743_s16 + $0xf8] sm:$0xff] }
  0x4a   : > { %v2174_v43 = vld [vmem:[%s2743_s16 + $0xb0] sm:$0xff]  ;;  %v2185_v44 = vld [vmem:[%s2743_s16 + $0x108] sm:$0xff]  ;;  %v2184_v45 = vld [vmem:[%s2743_s16 + $0x100] sm:$0xff] }
  0x4b   : > { %v2195_v46 = vld [vmem:[%s2743_s16 + $0x158] sm:$0xff]  ;;  %v2186_v47 = vld [vmem:[%s2743_s16 + $0x110] sm:$0xff]  ;;  %v2197_v48 = vld [vmem:[%s2743_s16 + $0x168] sm:$0xff] }
  0x4c   : > { %v2196_v49 = vld [vmem:[%s2743_s16 + $0x160] sm:$0xff]  ;;  %v2207_v50 = vld [vmem:[%s2743_s16 + $0x1b8] sm:$0xff]  ;;  %v2198_v51 = vld [vmem:[%s2743_s16 + $0x170] sm:$0xff] }
  0x4d   : > { %894 = vperm.xlu1 %2469, %v2188_v6   ;;  %831 = vperm.xlu0 %2468, %v2178_v7   ;;  %v2806_v52 = vld [vmem:[%s3193_s3 + $0x18] sm:$0xff]   ;;  %v2209_v53 = vld [vmem:[%s2743_s16 + $0x1c8] sm:$0xff]  ;;  %v2208_v54 = vld [vmem:[%s2743_s16 + $0x1c0] sm:$0xff] }
  0x4e   : > { %2351 = vmatprep.subr.bf16.mxu0 %v2806_v52  ;;  %2435 = vmatprep.subr.bf16.mxu1 %v2806_v52  ;;  %v672_v55 = vld [vmem:[%s2743_s16 + $0x58] sm:$0xff]  ;;  %v2210_v56 = vld [vmem:[%s2743_s16 + $0x1d0] sm:$0xff] }
  0x4f   : > { %2437 = vmatpush3.bf16.msra.mxu1 %v2806_v52  ;;  %v2187_v57 = vld [vmem:[%s2743_s16 + $0x118] sm:$0xff]  ;;  %v2820_v59 = vld [vmem:[%s3193_s3 + $0x10] sm:$0xff]  }
  0x50   : > { %v2175_v58 = vld [vmem:[%s2743_s16 + $0xb8] sm:$0xff]  ;;  %2436 = vmatprep.subr.bf16.mxu1 %v2820_v59 }
  0x51   : > { %904 = vperm.xlu1 %2469, %v2190_v8   ;;  %899 = vperm.xlu0 %2468, %v2189_v9   ;;  %v2211_v60 = vld [vmem:[%s2743_s16 + $0x1d8] sm:$0xff]  ;;  %v2835_v8 = vld [vmem:[%s3191_s1 + $0x1] ss:$0 sm:$0xff] }
  0x52   : > { %v2199_v61 = vld [vmem:[%s2743_s16 + $0x178] sm:$0xff] }
  0x53   : > { %2438 = vmatpush3.bf16.msra.mxu1 %v2820_v59  ;;  %v2830_v7 = vld [vmem:[%s3191_s1] ss:$0 sm:$0xff] }
  0x54   : > { %2383 = vmatprep.subr.bf16.mxu1 %v2517_v62 }
  0x55   : > { %695 = vperm.xlu1 %2469, %v665_v10   ;;  %690 = vperm.xlu0 %2468, %v664_v11  }
  0x59   : > { %700 = vperm.xlu1 %2469, %v666_v12   ;;  %967 = vperm.xlu0 %2468, %v2200_v13   ;;  %v2841_v12 = vld [vmem:[%s3192_s2] ss:$0 sm:$0xff]  ;;  %v2846_v13 = vld [vmem:[%s3191_s1 + $0x2] ss:$0 sm:$0xff] }
  0x5d   : > { %972 = vperm.xlu1 %2469, %v2201_v14   ;;  %705 = vperm.xlu0 %2468, %v667_v15  }
  0x61   : > { %763 = vperm.xlu1 %2469, %v2167_v17   ;;  %977 = vperm.xlu0 %2468, %v2202_v18  }
  0x65   : > { %773 = vperm.xlu1 %2469, %v2169_v20   ;;  %768 = vperm.xlu0 %2468, %v2168_v21  }
  0x69   : > { %836 = vperm.xlu1 %2469, %v2179_v22   ;;  %778 = vperm.xlu0 %2468, %v2170_v23  }
  0x6d   : > { %846 = vperm.xlu1 %2469, %v2181_v24   ;;  %841 = vperm.xlu0 %2468, %v2180_v25  }
  0x71   : > { %909 = vperm.xlu1 %2469, %v2191_v26   ;;  %851 = vperm.xlu0 %2468, %v2182_v27  }
  0x75   : > { %919 = vperm.xlu1 %2469, %v2193_v28   ;;  %914 = vperm.xlu0 %2468, %v2192_v29  }
  0x79   : > { %710 = vperm.xlu1 %2469, %v668_v30   ;;  %924 = vperm.xlu0 %2468, %v2194_v31  }
  0x7d   : > { %982 = vperm.xlu1 %2469, %v2203_v32   ;;  %715 = vperm.xlu0 %2468, %v669_v33  }
  0x81   : > { %720 = vperm.xlu1 %2469, %v670_v34   ;;  %987 = vperm.xlu0 %2468, %v2204_v35  }
  0x85   : > { %992 = vperm.xlu1 %2469, %v2205_v36   ;;  %725 = vperm.xlu0 %2468, %v671_v37  }
  0x89   : > { %783 = vperm.xlu1 %2469, %v2171_v38   ;;  %997 = vperm.xlu0 %2468, %v2206_v39  }
  0x8d   : > { %793 = vperm.xlu1 %2469, %v2173_v40   ;;  %788 = vperm.xlu0 %2468, %v2172_v41  }
  0x91   : > { %856 = vperm.xlu1 %2469, %v2183_v42   ;;  %798 = vperm.xlu0 %2468, %v2174_v43  }
  0x95   : > { %866 = vperm.xlu1 %2469, %v2185_v44   ;;  %861 = vperm.xlu0 %2468, %v2184_v45  }
  0x99   : > { %929 = vperm.xlu1 %2469, %v2195_v46   ;;  %871 = vperm.xlu0 %2468, %v2186_v47  }
  0x9d   : > { %939 = vperm.xlu1 %2469, %v2197_v48   ;;  %934 = vperm.xlu0 %2468, %v2196_v49  }
  0xa1   : > { %1002 = vperm.xlu1 %2469, %v2207_v50   ;;  %944 = vperm.xlu0 %2468, %v2198_v51  }
  0xa5   : > { %1012 = vperm.xlu1 %2469, %v2209_v53   ;;  %1007 = vperm.xlu0 %2468, %v2208_v54  }
  0xa9   : > { %730 = vperm.xlu1 %2469, %v672_v55   ;;  %1017 = vperm.xlu0 %2468, %v2210_v56  }
  0xad   : > { %876 = vperm.xlu1 %2469, %v2187_v57   ;;  %803 = vperm.xlu0 %2468, %v2175_v58  }
  0xb1   : > { %1022 = vperm.xlu1 %2469, %v2211_v60   ;;  %949 = vperm.xlu0 %2468, %v2199_v61  }
  0xb8   : > { %v686_v63 = vpop.permute.xlu1 %685  ;;  %v676_v0 = vpop.permute.xlu0 %675 }
  0xb9   : > { %v1055_v11 = vmul.f32 %v2830_v7, %v676_v0  ;;  %v1057_v22 = vmul.f32 %v2830_v7, %v686_v63 }
  0xbb   : > { %v1067_v19 = vadd.f32 %v2841_v12, %v1055_v11  ;;  %v1069_v42 = vadd.f32 %v2841_v12, %v1057_v22 }
  0xbc   : > { %v749_v1 = vpop.permute.xlu1 %748  ;;  %v681_v2 = vpop.permute.xlu0 %680 }
  0xbd   : > { %v1079_v14 = vmul.f32 %v2835_v8, %v749_v1  ;;  %v1139_v15 = vmul.f32 %v2830_v7, %v749_v1  ;;  %v1056_v16 = vmul.f32 %v2830_v7, %v681_v2 }
  0xbf   : > { %v1091_v25 = vadd.f32 %v1079_v14, %v1067_v19  ;;  %v1151_v26 = vadd.f32 %v2841_v12, %v1139_v15  ;;  %v1068_v29 = vadd.f32 %v2841_v12, %v1056_v16 }
  0xc0   : > { %v759_v3 = vpop.permute.xlu1 %758  ;;  %v754_v4 = vpop.permute.xlu0 %753 }
  0xc1   : > { %v1080_v23 = vmul.f32 %v2835_v8, %v754_v4  ;;  %v1140_v24 = vmul.f32 %v2830_v7, %v754_v4  ;;  %v1081_v34 = vmul.f32 %v2835_v8, %v759_v3  ;;  %v1141_v38 = vmul.f32 %v2830_v7, %v759_v3 }
  0xc3   : > { %v1092_v39 = vadd.f32 %v1080_v23, %v1068_v29  ;;  %v1152_v40 = vadd.f32 %v2841_v12, %v1140_v24  ;;  %v1093_v57 = vadd.f32 %v1081_v34, %v1069_v42  ;;  %v1153_v58 = vadd.f32 %v2841_v12, %v1141_v38  ;;  %v2909_v38 = vld [vmem:[%s3193_s3 + $0x28] sm:$0xff]  }
  0xc4   : > { %v827_v5 = vpop.permute.xlu1 %826  ;;  %v822_v6 = vpop.permute.xlu0 %821 }
  0xc5   : > { %v1103_v20 = vmul.f32 %v2846_v13, %v822_v6  ;;  %v1163_v21 = vmul.f32 %v2835_v8, %v822_v6  ;;  %v1223_v27 = vmul.f32 %v2830_v7, %v822_v6  ;;  %v1104_v30 = vmul.f32 %v2846_v13, %v827_v5 }
  0xc6   : > { %v1164_v31 = vmul.f32 %v2835_v8, %v827_v5  ;;  %v1224_v41 = vmul.f32 %v2830_v7, %v827_v5 }
  0xc7   : > { %v1115_v35 = vadd.f32 %v1103_v20, %v1091_v25  ;;  %v1175_v36 = vadd.f32 %v1163_v21, %v1151_v26  ;;  %v1235_v43 = vadd.f32 %v2841_v12, %v1223_v27  ;;  %v1116_v46 = vadd.f32 %v1104_v30, %v1092_v39 }
  0xc8   : > { %v895_v9 = vpop.permute.xlu1 %894  ;;  %v832_v10 = vpop.permute.xlu0 %831  ;;  %v1176_v47 = vadd.f32 %v1164_v31, %v1152_v40  ;;  %v1236_v60 = vadd.f32 %v2841_v12, %v1224_v41 }
  0xc9   : > { %v1187_v28 = vmul.f32 %v2846_v13, %v895_v9  ;;  %v1247_v37 = vmul.f32 %v2835_v8, %v895_v9  ;;  %v1105_v48 = vmul.f32 %v2846_v13, %v832_v10  ;;  %v1165_v49 = vmul.f32 %v2835_v8, %v832_v10 }
  0xca   : > { %v1127_v53 = vmax.f32 %v1115_v35, 0.0  ;;  %v1225_v61 = vmul.f32 %v2830_v7, %v832_v10  ;;  %v1128_v3 = vmax.f32 %v1116_v46, 0.0 }
  0xcb   : > { %v1199_v44 = vadd.f32 %v1187_v28, %v1175_v36  ;;  %v1259_v54 = vadd.f32 %v1247_v37, %v1235_v43  ;;  %v1117_v4 = vadd.f32 %v1105_v48, %v1093_v57  ;;  %v1177_v5 = vadd.f32 %v1165_v49, %v1153_v58 }
  0xcc   : > { %v905_v17 = vpop.permute.xlu1 %904  ;;  %v900_v18 = vpop.permute.xlu0 %899 }
  0xcd   : > { %v1188_v45 = vmul.f32 %v2846_v13, %v900_v18  ;;  %v1248_v55 = vmul.f32 %v2835_v8, %v900_v18  ;;  %v1189_v63 = vmul.f32 %v2846_v13, %v905_v17  ;;  %v1211_v2 = vmax.f32 %v1127_v53, %v1199_v44 }
  0xce   : > { %v1249_v11 = vmul.f32 %v2835_v8, %v905_v17  ;;  %v1237_v18 = vadd.f32 %v2841_v12, %v1225_v61  ;;  %v1129_v24 = vmax.f32 %v1117_v4, 0.0 }
  0xcf   : > { %v1200_v0 = vadd.f32 %v1188_v45, %v1176_v47  ;;  %v1260_v14 = vadd.f32 %v1248_v55, %v1236_v60  ;;  %v1201_v10 = vadd.f32 %v1189_v63, %v1177_v5 }
  0xd0   : > { %v2863_v32 = vpop.permute.xlu1 %695  ;;  %v2865_v33 = vpop.permute.xlu0 %690  ;;  %v1261_v25 = vadd.f32 %v1249_v11, %v1237_v18 }
  0xd1   : > { %v1212_v19 = vmax.f32 %v1128_v3, %v1200_v0  ;;  %v1213_v27 = vmax.f32 %v1129_v24, %v1201_v10  ;;  %v1058_v43 = vmul.f32 %v2830_v7, %v2865_v33 }
  0xd4   : > { %v701_v50 = vpop.permute.xlu1 %700  ;;  %v968_v51 = vpop.permute.xlu0 %967 }
  0xd5   : > { %v1271_v56 = vmul.f32 %v2846_v13, %v968_v51  ;;  %v1060_v44 = vmul.f32 %v2830_v7, %v701_v50 }
  0xd7   : > { %v1283_v1 = vadd.f32 %v1271_v56, %v1259_v54 }
  0xd8   : > { %v973_v6 = vpop.permute.xlu1 %972  ;;  %v706_v9 = vpop.permute.xlu0 %705 }
  0xd9   : > { %v1272_v15 = vmul.f32 %v2846_v13, %v973_v6  ;;  %v2885_v16 = vmax.f32 %v1211_v2, %v1283_v1  ;;  %v1061_v45 = vmul.f32 %v2830_v7, %v706_v9 }
  0xdb   : > { %v1284_v20 = vadd.f32 %v1272_v15, %v1260_v14  ;;  %v1314_v21 = vpack.c.bf16 %v2885_v16, %v2517_v62  ;;  %v1073_v50 = vadd.f32 %v2841_v12, %v1061_v45 }
  0xdc   : > { %v764_v22 = vpop.permute.xlu1 %763  ;;  %v978_v23 = vpop.permute.xlu0 %977 }
  0xdd   : > { %v2890_v26 = vmax.f32 %v1212_v19, %v1284_v20  ;;  %v1273_v17 = vmul.f32 %v2846_v13, %v978_v23  ;;  %2339 = vmatprep.mubr.msk.bf16.mxu0 %vm1336_vm0, %v1314_v21  ;;  %v1082_v46 = vmul.f32 %v2835_v8, %v764_v22  ;;  %v1142_v49 = vmul.f32 %v2830_v7, %v764_v22 }
  0xdf   : > { %v1285_v28 = vadd.f32 %v1273_v17, %v1261_v25  ;;  %v1448_v29 = vpack.c.bf16 %v2890_v26, %v2885_v16  ;;  %v1154_v0 = vadd.f32 %v2841_v12, %v1142_v49 }
  0xe0   : > { %v774_v30 = vpop.permute.xlu1 %773  ;;  %v769_v31 = vpop.permute.xlu0 %768 }
  0xe1   : > { %v2896_v34 = vmax.f32 %v1213_v27, %v1285_v28  ;;  %v1083_v51 = vmul.f32 %v2835_v8, %v769_v31  ;;  %v1143_v33 = vmul.f32 %v2830_v7, %v769_v31  ;;  %v1084_v56 = vmul.f32 %v2835_v8, %v774_v30 }
  0xe2   : > { %v1144_v57 = vmul.f32 %v2830_v7, %v774_v30 }
  0xe3   : > { %v2900_v35 = vpack.c.bf16 %v2896_v34, %v2890_v26  ;;  %v1155_v4 = vadd.f32 %v2841_v12, %v1143_v33 }
  0xe4   : > { %v837_v36 = vpop.permute.xlu1 %836  ;;  %v779_v37 = vpop.permute.xlu0 %778  ;;  %v1156_v19 = vadd.f32 %v2841_v12, %v1144_v57 }
  0xe5   : > { %2340 = vmatmul.mubr.msk.bf16.vlgmr.msra.gmra.mxu0 %vm1336_vm0, %v2900_v35  ;;  %v1106_v55 = vmul.f32 %v2846_v13, %v837_v36  ;;  %v1166_v58 = vmul.f32 %v2835_v8, %v837_v36  ;;  %v1226_v60 = vmul.f32 %v2830_v7, %v837_v36  ;;  %v1085_v5 = vmul.f32 %v2835_v8, %v779_v37 }
  0xe6   : > { %2352 = vmatpush3.bf16.msra.mxu0 %v2806_v52  ;;  %v1059_v52 = vmul.f32 %v2830_v7, %v2863_v32  ;;  %v1072_v32 = vadd.f32 %v2841_v12, %v1060_v44  ;;  %v1145_v6 = vmul.f32 %v2830_v7, %v779_v37 }
  0xe7   : > { %2353 = vmatprep.subr.bf16.mxu0 %v2820_v59  ;;  %v1178_v20 = vadd.f32 %v1166_v58, %v1154_v0  ;;  %v1238_v21 = vadd.f32 %v2841_v12, %v1226_v60  ;;  %v1097_v28 = vadd.f32 %v1085_v5, %v1073_v50 }
  0xe8   : > { %v847_v39 = vpop.permute.xlu1 %846  ;;  %v842_v40 = vpop.permute.xlu0 %841  ;;  %v1071_v53 = vadd.f32 %v2841_v12, %v1059_v52  ;;  %v1096_v10 = vadd.f32 %v1084_v56, %v1072_v32  ;;  %v1157_v30 = vadd.f32 %v2841_v12, %v1145_v6 }
  0xe9   : > { %v1107_v2 = vmul.f32 %v2846_v13, %v842_v40  ;;  %v1167_v3 = vmul.f32 %v2835_v8, %v842_v40  ;;  %v1227_v14 = vmul.f32 %v2830_v7, %v842_v40  ;;  %v1108_v31 = vmul.f32 %v2846_v13, %v847_v39 }
  0xea   : > { %2354 = vmatpush3.bf16.msra.mxu0 %v2820_v59  ;;  %v1070_v59 = vadd.f32 %v2841_v12, %v1058_v43  ;;  %v1095_v1 = vadd.f32 %v1083_v51, %v1071_v53  ;;  %v1168_v52 = vmul.f32 %v2835_v8, %v847_v39  ;;  %v1228_v44 = vmul.f32 %v2830_v7, %v847_v39 }
  0xeb   : > { %2367 = vmatprep.subr.bf16.mxu0 %v2909_v38  ;;  %v1179_v25 = vadd.f32 %v1167_v3, %v1155_v4  ;;  %v1239_v40 = vadd.f32 %v2841_v12, %v1227_v14  ;;  %v1120_v32 = vadd.f32 %v1108_v31, %v1096_v10 }
  0xec   : > { %v910_v41 = vpop.permute.xlu1 %909  ;;  %v2913_v42 = vpop.permute.xlu0 %851  ;;  %v1094_v54 = vadd.f32 %v1082_v46, %v1070_v59  ;;  %v1119_v24 = vadd.f32 %v1107_v2, %v1095_v1  ;;  %v1180_v60 = vadd.f32 %v1168_v52, %v1156_v19  ;;  %v1240_v0 = vadd.f32 %v2841_v12, %v1228_v44 }
  0xed   : > { %v1190_v9 = vmul.f32 %v2846_v13, %v910_v41  ;;  %v1250_v15 = vmul.f32 %v2835_v8, %v910_v41  ;;  %v1109_v45 = vmul.f32 %v2846_v13, %v2913_v42  ;;  %v1169_v46 = vmul.f32 %v2835_v8, %v2913_v42 }
  0xee   : > { %v1118_v11 = vadd.f32 %v1106_v55, %v1094_v54  ;;  %v1131_v49 = vmax.f32 %v1119_v24, 0.0  ;;  %v1229_v54 = vmul.f32 %v2830_v7, %v2913_v42  ;;  %v1132_v10 = vmax.f32 %v1120_v32, 0.0 }
  0xef   : > { %v1202_v36 = vadd.f32 %v1190_v9, %v1178_v20  ;;  %v1262_v41 = vadd.f32 %v1250_v15, %v1238_v21  ;;  %v1121_v1 = vadd.f32 %v1109_v45, %v1097_v28  ;;  %v1181_v2 = vadd.f32 %v1169_v46, %v1157_v30 }
  0xf0   : > { %v920_v47 = vpop.permute.xlu1 %919  ;;  %v915_v48 = vpop.permute.xlu0 %914  ;;  %v1130_v37 = vmax.f32 %v1118_v11, 0.0 }
  0xf1   : > { %v1191_v18 = vmul.f32 %v2846_v13, %v915_v48  ;;  %v1251_v17 = vmul.f32 %v2835_v8, %v915_v48  ;;  %v1192_v39 = vmul.f32 %v2846_v13, %v920_v47  ;;  %v1252_v55 = vmul.f32 %v2835_v8, %v920_v47 }
  0xf2   : > { %v1214_v50 = vmax.f32 %v1130_v37, %v1202_v36  ;;  %v1241_v47 = vadd.f32 %v2841_v12, %v1229_v54  ;;  %v1133_v21 = vmax.f32 %v1121_v1, 0.0 }
  0xf3   : > { %v1203_v43 = vadd.f32 %v1191_v18, %v1179_v25  ;;  %v1263_v51 = vadd.f32 %v1251_v17, %v1239_v40  ;;  %v1204_v11 = vadd.f32 %v1192_v39, %v1180_v60  ;;  %v1264_v14 = vadd.f32 %v1252_v55, %v1240_v0 }
  0xf4   : > { %v2934_v61 = vpop.permute.xlu1 %710  ;;  %v925_v63 = vpop.permute.xlu0 %924 }
  0xf5   : > { %v1215_v56 = vmax.f32 %v1131_v49, %v1203_v43  ;;  %v1193_v57 = vmul.f32 %v2846_v13, %v925_v63  ;;  %v1253_v5 = vmul.f32 %v2835_v8, %v925_v63  ;;  %v1216_v25 = vmax.f32 %v1132_v10, %v1204_v11 }
  0xf6   : > { %v1062_v43 = vmul.f32 %v2830_v7, %v2934_v61 }
  0xf7   : > { %v1205_v15 = vadd.f32 %v1193_v57, %v1181_v2  ;;  %v1265_v63 = vadd.f32 %v1253_v5, %v1241_v47 }
  0xf8   : > { %v983_v22 = vpop.permute.xlu1 %982  ;;  %v2948_v23 = vpop.permute.xlu0 %715 }
  0xf9   : > { %v1274_v27 = vmul.f32 %v2846_v13, %v983_v22  ;;  %v1217_v17 = vmax.f32 %v1133_v21, %v1205_v15 }
  0xfb   : > { %v1286_v53 = vadd.f32 %v1274_v27, %v1262_v41 }
  0xfc   : > { %v721_v48 = vpop.permute.xlu1 %720  ;;  %v988_v59 = vpop.permute.xlu0 %987 }
  0xfd   : > { %v1275_v33 = vmul.f32 %v2846_v13, %v988_v59  ;;  %v2969_v6 = vmax.f32 %v1214_v50, %v1286_v53  ;;  %v1064_v52 = vmul.f32 %v2830_v7, %v721_v48  ;;  %v1063_v59 = vmul.f32 %v2830_v7, %v2948_v23 }
  0xff   : > { %v1287_v58 = vadd.f32 %v1275_v33, %v1263_v51  ;;  %v1074_v51 = vadd.f32 %v2841_v12, %v1062_v43  ;;  %v1076_v61 = vadd.f32 %v2841_v12, %v1064_v52 }
 0x100   : > { %v993_v3 = vpop.permute.xlu1 %992  ;;  %v726_v4 = vpop.permute.xlu0 %725 }
 0x101   : > { %v2971_v42 = vmax.f32 %v1215_v56, %v1287_v58  ;;  %v1276_v9 = vmul.f32 %v2846_v13, %v993_v3  ;;  %v1065_v49 = vmul.f32 %v2830_v7, %v726_v4  ;;  %v1075_v58 = vadd.f32 %v2841_v12, %v1063_v59 }
 0x103   : > { %v2977_v18 = vpack.c.bf16 %v2971_v42, %v2969_v6  ;;  %v1288_v22 = vadd.f32 %v1276_v9, %v1264_v14  ;;  %v1077_v60 = vadd.f32 %v2841_v12, %v1065_v49 }
 0x104   : > { %v784_v19 = vpop.permute.xlu1 %783  ;;  %v998_v20 = vpop.permute.xlu0 %997 }
 0x105   : > { %v1277_v24 = vmul.f32 %v2846_v13, %v998_v20  ;;  %2343 = vmatprep.mubr.msk.bf16.mxu0 %vm1336_vm0, %v2977_v18  ;;  %v2982_v31 = vmax.f32 %v1216_v25, %v1288_v22  ;;  %v1086_v44 = vmul.f32 %v2835_v8, %v784_v19  ;;  %v1146_v53 = vmul.f32 %v2830_v7, %v784_v19 }
 0x107   : > { %v1289_v27 = vadd.f32 %v1277_v24, %v1265_v63  ;;  %v1098_v54 = vadd.f32 %v1086_v44, %v1074_v51  ;;  %v1158_v2 = vadd.f32 %v2841_v12, %v1146_v53 }
 0x108   : > { %v794_v28 = vpop.permute.xlu1 %793  ;;  %v789_v30 = vpop.permute.xlu0 %788 }
 0x109   : > { %v2984_v36 = vmax.f32 %v1217_v17, %v1289_v27  ;;  %v1088_v33 = vmul.f32 %v2835_v8, %v794_v28  ;;  %v1148_v48 = vmul.f32 %v2830_v7, %v794_v28  ;;  %v1087_v50 = vmul.f32 %v2835_v8, %v789_v30 }
 0x10a   : > { %v1147_v39 = vmul.f32 %v2830_v7, %v789_v30 }
 0x10b   : > { %v2988_v37 = vpack.c.bf16 %v2984_v36, %v2982_v31  ;;  %v1100_v3 = vadd.f32 %v1088_v33, %v1076_v61  ;;  %v1160_v9 = vadd.f32 %v2841_v12, %v1148_v48  ;;  %v1099_v47 = vadd.f32 %v1087_v50, %v1075_v58 }
 0x10c   : > { %v857_v40 = vpop.permute.xlu1 %856  ;;  %v799_v41 = vpop.permute.xlu0 %798  ;;  %v1159_v15 = vadd.f32 %v2841_v12, %v1147_v39 }
 0x10d   : > { %2344 = vmatmul.mubr.msk.bf16.gmra.mxu0 %vm1336_vm0, %v2988_v37  ;;  %v1110_v32 = vmul.f32 %v2846_v13, %v857_v40  ;;  %v1170_v23 = vmul.f32 %v2835_v8, %v857_v40  ;;  %v1230_v55 = vmul.f32 %v2830_v7, %v857_v40  ;;  %v1089_v0 = vmul.f32 %v2835_v8, %v799_v41 }
 0x10e   : > { %v1149_v1 = vmul.f32 %v2830_v7, %v799_v41 }
 0x10f   : > { %v1122_v4 = vadd.f32 %v1110_v32, %v1098_v54  ;;  %v1182_v10 = vadd.f32 %v1170_v23, %v1158_v2  ;;  %v1242_v19 = vadd.f32 %v2841_v12, %v1230_v55  ;;  %v1101_v22 = vadd.f32 %v1089_v0, %v1077_v60 }
 0x110   : > { %v867_v45 = vpop.permute.xlu1 %866  ;;  %v862_v46 = vpop.permute.xlu0 %861  ;;  %v1161_v24 = vadd.f32 %v2841_v12, %v1149_v1 }
 0x111   : > { %v1112_v5 = vmul.f32 %v2846_v13, %v867_v45  ;;  %v1172_v11 = vmul.f32 %v2835_v8, %v867_v45  ;;  %v1111_v14 = vmul.f32 %v2846_v13, %v862_v46  ;;  %v1232_v20 = vmul.f32 %v2830_v7, %v867_v45 }
 0x112   : > { %v1171_v25 = vmul.f32 %v2835_v8, %v862_v46  ;;  %v1231_v17 = vmul.f32 %v2830_v7, %v862_v46  ;;  %v1134_v27 = vmax.f32 %v1122_v4, 0.0 }
 0x113   : > { %v1124_v28 = vadd.f32 %v1112_v5, %v1100_v3  ;;  %v1184_v41 = vadd.f32 %v1172_v11, %v1160_v9  ;;  %v1123_v43 = vadd.f32 %v1111_v14, %v1099_v47  ;;  %v1244_v45 = vadd.f32 %v2841_v12, %v1232_v20 }
 0x114   : > { %v930_v56 = vpop.permute.xlu1 %929  ;;  %v872_v57 = vpop.permute.xlu0 %871  ;;  %v1183_v33 = vadd.f32 %v1171_v25, %v1159_v15  ;;  %v1243_v32 = vadd.f32 %v2841_v12, %v1231_v17 }
 0x115   : > { %v1194_v30 = vmul.f32 %v2846_v13, %v930_v56  ;;  %v1254_v52 = vmul.f32 %v2835_v8, %v930_v56  ;;  %v1113_v59 = vmul.f32 %v2846_v13, %v872_v57  ;;  %v1173_v49 = vmul.f32 %v2835_v8, %v872_v57 }
 0x116   : > { %v1136_v50 = vmax.f32 %v1124_v28, 0.0  ;;  %v1233_v39 = vmul.f32 %v2830_v7, %v872_v57  ;;  %v1135_v55 = vmax.f32 %v1123_v43, 0.0 }
 0x117   : > { %v1206_v54 = vadd.f32 %v1194_v30, %v1182_v10  ;;  %v1266_v56 = vadd.f32 %v1254_v52, %v1242_v19  ;;  %v1125_v0 = vadd.f32 %v1113_v59, %v1101_v22  ;;  %v1185_v1 = vadd.f32 %v1173_v49, %v1161_v24 }
 0x118   : > { %v940_v21 = vpop.permute.xlu1 %939  ;;  %v935_v63 = vpop.permute.xlu0 %934  ;;  %v1245_v15 = vadd.f32 %v2841_v12, %v1233_v39 }
 0x119   : > { %v1196_v40 = vmul.f32 %v2846_v13, %v940_v21  ;;  %v1195_v44 = vmul.f32 %v2846_v13, %v935_v63  ;;  %v1256_v46 = vmul.f32 %v2835_v8, %v940_v21  ;;  %v1255_v61 = vmul.f32 %v2835_v8, %v935_v63 }
 0x11a   : > { %v1218_v57 = vmax.f32 %v1134_v27, %v1206_v54  ;;  %v1137_v22 = vmax.f32 %v1125_v0, 0.0 }
 0x11b   : > { %v1208_v23 = vadd.f32 %v1196_v40, %v1184_v41  ;;  %v1207_v58 = vadd.f32 %v1195_v44, %v1183_v33  ;;  %v1268_v2 = vadd.f32 %v1256_v46, %v1244_v45  ;;  %v1267_v9 = vadd.f32 %v1255_v61, %v1243_v32 }
 0x11c   : > { %v1003_v51 = vpop.permute.xlu1 %1002  ;;  %v945_v53 = vpop.permute.xlu0 %944 }
 0x11d   : > { %v1278_v48 = vmul.f32 %v2846_v13, %v1003_v51  ;;  %v1197_v60 = vmul.f32 %v2846_v13, %v945_v53  ;;  %v1257_v3 = vmul.f32 %v2835_v8, %v945_v53  ;;  %v1220_v10 = vmax.f32 %v1136_v50, %v1208_v23 }
 0x11e   : > { %v1219_v19 = vmax.f32 %v1135_v55, %v1207_v58 }
 0x11f   : > { %v1290_v47 = vadd.f32 %v1278_v48, %v1266_v56  ;;  %v1209_v20 = vadd.f32 %v1197_v60, %v1185_v1  ;;  %v1269_v24 = vadd.f32 %v1257_v3, %v1245_v15 }
 0x120   : > { %v1013_v4 = vpop.permute.xlu1 %1012  ;;  %v1008_v5 = vpop.permute.xlu0 %1007 }
 0x121   : > { %v1280_v11 = vmul.f32 %v2846_v13, %v1013_v4  ;;  %v1279_v14 = vmul.f32 %v2846_v13, %v1008_v5  ;;  %v1302_v28 = vmax.f32 %v1218_v57, %v1290_v47  ;;  %v1221_v52 = vmax.f32 %v1137_v22, %v1209_v20 }
 0x122   : > { %v1450_v47 = vpack.c.bf16 %v2982_v31, %v2971_v42 }
 0x123   : > { %v1292_v21 = vadd.f32 %v1280_v11, %v1268_v2  ;;  %v1291_v63 = vadd.f32 %v1279_v14, %v1267_v9  ;;  %v1449_v9 = vpack.c.bf16 %v2969_v6, %v2896_v34  ;;  %v1451_v26 = vpack.c.bf16 %v1302_v28, %v2984_v36  ;;  %v2476_v34 = vld [vmem:[%s3195_s5 + $0x8] sm:$0xff]   ;;  %v2481_v6 = vld [vmem:[%s3195_s5 + $0x30] sm:$0xff]  }
 0x124   : > { %v731_v25 = vpop.permute.xlu1 %730  ;;  %v1018_v17 = vpop.permute.xlu0 %1017 }
 0x125   : > { %v1303_v30 = vmax.f32 %v1219_v19, %v1291_v63  ;;  %v1281_v40 = vmul.f32 %v2846_v13, %v1018_v17  ;;  %v1304_v41 = vmax.f32 %v1220_v10, %v1292_v21  ;;  %v1066_v43 = vmul.f32 %v2830_v7, %v731_v25 }
 0x127   : > { %v1318_v27 = vpack.c.bf16 %v1303_v30, %v1302_v28  ;;  %v1293_v44 = vadd.f32 %v1281_v40, %v1269_v24  ;;  %v1452_v45 = vpack.c.bf16 %v1304_v41, %v1303_v30  ;;  %v1078_v53 = vadd.f32 %v2841_v12, %v1066_v43  ;;  %v2218_v30 = vld [vmem:[%s3194_s4] ss:$0 sm:$0xff] }
 0x128   : > { %v877_v59 = vpop.permute.xlu1 %876  ;;  %v804_v49 = vpop.permute.xlu0 %803 }
 0x129   : > { %v1305_v46 = vmax.f32 %v1221_v52, %v1293_v44  ;;  %v1234_v51 = vmul.f32 %v2830_v7, %v877_v59  ;;  %2347 = vmatprep.mubr.msk.bf16.mxu0 %vm1336_vm0, %v1318_v27  ;;  %v1090_v33 = vmul.f32 %v2835_v8, %v804_v49  ;;  %v1150_v32 = vmul.f32 %v2830_v7, %v804_v49 }
 0x12a   : > { %2363 = vmatprep.mubr.msk.bf16.mxu1 %vm1336_vm0, %v1452_v45  ;;  %v1114_v48 = vmul.f32 %v2846_v13, %v877_v59  ;;  %v1174_v50 = vmul.f32 %v2835_v8, %v877_v59 }
 0x12b   : > { %v1319_v61 = vpack.c.bf16 %v1305_v46, %v1304_v41  ;;  %v1102_v54 = vadd.f32 %v1090_v33, %v1078_v53  ;;  %v1162_v39 = vadd.f32 %v2841_v12, %v1150_v32  ;;  %v1246_v56 = vadd.f32 %v2841_v12, %v1234_v51 }
 0x12c   : > { %v1023_v23 = vpop.permute.xlu1 %1022  ;;  %v950_v55 = vpop.permute.xlu0 %949 }
 0x12d   : > { %v1198_v58 = vmul.f32 %v2846_v13, %v950_v55  ;;  %v1258_v60 = vmul.f32 %v2835_v8, %v950_v55  ;;  %2348 = vmatmul.mubr.msk.bf16.gmra.mxu0 %vm1336_vm0, %v1319_v61  ;;  %v1126_v7 = vadd.f32 %v1114_v48, %v1102_v54  ;;  %v1186_v0 = vadd.f32 %v1174_v50, %v1162_v39  ;;  %v2475_v8 = vld [vmem:[%s3193_s3 + $0x20] sm:$0xff]  }
 0x12e   : > { %2355 = vmatprep.mubr.msk.bf16.mxu0 %vm1336_vm0, %v1448_v29  ;;  %v1282_v1 = vmul.f32 %v2846_v13, %v1023_v23 }
 0x12f   : > { %v1270_v2 = vadd.f32 %v1258_v60, %v1246_v56  ;;  %v1138_v3 = vmax.f32 %v1126_v7, 0.0  ;;  %v1210_v4 = vadd.f32 %v1198_v58, %v1186_v0 }
 0x131   : > { %v1294_v5 = vadd.f32 %v1282_v1, %v1270_v2  ;;  %v1222_v12 = vmax.f32 %v1138_v3, %v1210_v4  ;;  %v2479_v1 = vld [vmem:[%s3195_s5 + $0x18] sm:$0xff]  }
 0x133   : > { %v1306_v16 = vmax.f32 %v1222_v12, %v1294_v5 }
 0x135   : > { %2356 = vmatmul.mubr.msk.bf16.vlgmr.msra.gmra.mxu0 %vm1336_vm0, %v1449_v9  ;;  %v1453_v13 = vpack.c.bf16 %v1306_v16, %v1305_v46  ;;  %v1582_v29 = vpack.c.bf16 %v2517_v62, %v1306_v16 }
 0x136   : > { %2368 = vmatpush3.bf16.msra.mxu0 %v2909_v38  ;;  %2359 = vmatprep.mubr.msk.bf16.mxu0 %vm1336_vm0, %v1450_v47  ;;  %v2477_v38 = vld [vmem:[%s3195_s5 + $0x38] sm:$0xff]  }
 0x137   : > { %2369 = vmatprep.subr.bf16.mxu0 %v2475_v8  ;;  %2364 = vmatmul.mubr.msk.bf16.vlgmr.msra.gmra.mxu1 %vm1336_vm0, %v1453_v13 }
 0x138   : > { %2384 = vmatpush3.bf16.msra.mxu1 %v2476_v34  ;;  %2387 = vmatprep.mubr.msk.bf16.mxu1 %vm2518_vm1, %v2517_v62 }
 0x139   : > { %2385 = vmatprep.subr.bf16.mxu1 %v2517_v62 }
 0x13a   : > { %2370 = vmatpush3.bf16.msra.mxu0 %v2475_v8 }
 0x13b   : > { %2407 = vmatprep.subr.bf16.mxu0 %v2517_v62 }
 0x13d   : > { %2360 = vmatmul.mubr.msk.bf16.gmra.mxu0 %vm1336_vm0, %v1451_v26 }
 0x13e   : > { %2371 = vmatprep.mubr.msk.bf16.mxu0 %vm1336_vm0, %v2900_v35  ;;  %v2478_v35 = vld [vmem:[%s3195_s5] sm:$0xff]  }
 0x13f   : > { %2386 = vmatpush3.bf16.msra.mxu1 %v2478_v35  ;;  %v2480_v35 = vld [vmem:[%s3195_s5 + $0x10] sm:$0xff]  }
 0x140   : > { %2391 = vmatprep.subr.bf16.mxu1 %v2517_v62 }
 0x145   : > { %2372 = vmatmul.mubr.msk.bf16.vlgmr.msra.gmra.mxu0 %vm1336_vm0, %v2977_v18 }
 0x146   : > { %2375 = vmatprep.mubr.msk.bf16.mxu0 %vm1336_vm0, %v2988_v37  ;;  %2408 = vmatpush3.bf16.msra.mxu0 %v2477_v38 }
 0x147   : > { %2409 = vmatprep.subr.bf16.mxu0 %v2517_v62 }
 0x14a   : > { %2410 = vmatpush3.bf16.msra.mxu0 %v2481_v6 }
 0x14d   : > { %2376 = vmatmul.mubr.msk.bf16.gmra.mxu0 %vm1336_vm0, %v1318_v27 }
 0x14e   : > { %2379 = vmatprep.mubr.msk.bf16.mxu0 %vm1336_vm0, %v1319_v61 }
 0x155   : > { %2380 = vmatmul.mubr.msk.bf16.gmra.mxu0 %vm1336_vm0, %v1582_v29 }
 0x156   : > { %2411 = vmatprep.mubr.msk.bf16.mxu0 %vm2518_vm1, %v2517_v62 }
 0x1a5   : > { %v2341_v42 = vpop.f32.mrf.mxu0 }
 0x1a6   : > { %v1438_v43 = vadd.f32 %v2341_v42, %v2218_v30 }
 0x1a7   : > { %v1389_v18 = vpop.f32.mrf.mxu0 }
 0x1a8   : > { %v1436_v27 = vadd.f32 %v2218_v30, %v1389_v18 }
 0x1a9   : > { %v2342_v31 = vpop.f32.mrf.mxu0 }
 0x1aa   : > { %v1439_v56 = vadd.f32 %v2342_v31, %v2218_v30 }
 0x1ab   : > { %v1392_v36 = vpop.f32.mrf.mxu0 }
 0x1ac   : > { %v1437_v44 = vadd.f32 %v2218_v30, %v1392_v36 }
 0x1cd   : > { %v2345_v37 = vpop.f32.mrf.mxu0 }
 0x1ce   : > { %v1442_v26 = vadd.f32 %v2345_v37, %v2218_v30 }
 0x1cf   : > { %v1405_v11 = vpop.f32.mrf.mxu0 }
 0x1d0   : > { %v1440_v50 = vadd.f32 %v2218_v30, %v1405_v11 }
 0x1d1   : > { %v2346_v14 = vpop.f32.mrf.mxu0 }
 0x1d2   : > { %v1443_v8 = vadd.f32 %v2346_v14, %v2218_v30 }
 0x1d3   : > { %v1408_v57 = vpop.f32.mrf.mxu0 }
 0x1d4   : > { %v1441_v58 = vadd.f32 %v2218_v30, %v1408_v57 }
 0x1ed   : > { %v2349_v15 = vpop.f32.mrf.mxu0 }
 0x1ee   : > { %v1446_v36 = vadd.f32 %v2349_v15, %v2218_v30 }
 0x1ef   : > { %v1421_v10 = vpop.f32.mrf.mxu0 }
 0x1f0   : > { %v1444_v47 = vadd.f32 %v2218_v30, %v1421_v10 }
 0x1f1   : > { %v2350_v19 = vpop.f32.mrf.mxu0 }
 0x1f2   : > { %v1447_v29 = vadd.f32 %v2350_v19, %v2218_v30 }
 0x1f3   : > { %v1424_v20 = vpop.f32.mrf.mxu0 }
 0x1f4   : > { %v1445_v11 = vadd.f32 %v2218_v30, %v1424_v20 }
 0x1f5   : > { %v2357_v21 = vpop.f32.mrf.mxu0 }
 0x1f6   : > { %v1572_v45 = vadd.f32 %v2357_v21, %v1438_v43 }
 0x1f7   : > { %v1523_v63 = vpop.f32.mrf.mxu0  ;;  %v2365_v46 = vpop.f32.mrf.mxu1 }
 0x1f8   : > { %v1570_v49 = vadd.f32 %v1523_v63, %v1436_v27  ;;  %v1580_v63 = vadd.f32 %v2365_v46, %v1446_v36 }
 0x1f9   : > { %v2358_v22 = vpop.f32.mrf.mxu0  ;;  %v1555_v54 = vpop.f32.mrf.mxu1 }
 0x1fa   : > { %v1573_v2 = vadd.f32 %v2358_v22, %v1439_v56  ;;  %v1578_v38 = vadd.f32 %v1555_v54, %v1444_v47  ;;  %v2491_v54 = vld [vmem:[%s3197_s7] sm:$0xff]  }
 0x1fb   : > { %v1526_v24 = vpop.f32.mrf.mxu0  ;;  %v2366_v3 = vpop.f32.mrf.mxu1 }
 0x1fc   : > { %v1571_v51 = vadd.f32 %v1526_v24, %v1437_v44  ;;  %v1581_v37 = vadd.f32 %v2366_v3, %v1447_v29 }
 0x1fd   : > { %v2361_v25 = vpop.f32.mrf.mxu0  ;;  %v1558_v6 = vpop.f32.mrf.mxu1 }
 0x1fe   : > { %v1576_v57 = vadd.f32 %v2361_v25, %v1442_v26  ;;  %v1579_v22 = vadd.f32 %v1558_v6, %v1445_v11 }
 0x1ff   : > { %v1539_v17 = vpop.f32.mrf.mxu0 }
 0x200   : > { %v1574_v60 = vadd.f32 %v1539_v17, %v1440_v50  ;;  %v2482_v17 = vld [vmem:[%s3195_s5 + $0x28] sm:$0xff]  }
 0x201   : > { %v2362_v28 = vpop.f32.mrf.mxu0  ;;  %v2490_v50 = vld [vmem:[%s3197_s7 + $0x8] sm:$0xff]  }
 0x202   : > { %v1577_v42 = vadd.f32 %v2362_v28, %v1443_v8 }
 0x203   : > { %v1542_v40 = vpop.f32.mrf.mxu0 }
 0x204   : > { %v1575_v4 = vadd.f32 %v1542_v40, %v1441_v58 }
 0x205   : > { %v2373_v41 = vpop.f32.mrf.mxu0 }
 0x206   : > { %v1686_v53 = vadd.f32 %v2373_v41, %v1572_v45 }
 0x207   : > { %v1637_v52 = vpop.f32.mrf.mxu0 }
 0x208   : > { %v1684_v32 = vadd.f32 %v1637_v52, %v1570_v49  ;;  %v1704_v39 = vmax.f32 %v1686_v53, 0.0  ;;  %v2483_v52 = vld [vmem:[%s3195_s5 + $0x20] sm:$0xff]   ;;  %v2484_v49 = vld [vmem:[%s3197_s7 + $0x38] sm:$0xff]   ;;  %v2485_v53 = vld [vmem:[%s3197_s7 + $0x30] sm:$0xff]  }
 0x209   : > { %v2374_v59 = vpop.f32.mrf.mxu0 }
 0x20a   : > { %v1687_v16 = vadd.f32 %v2374_v59, %v1573_v2 }
 0x20b   : > { %v1640_v33 = vpop.f32.mrf.mxu0 }
 0x20c   : > { %v1685_v61 = vadd.f32 %v1640_v33, %v1571_v51  ;;  %v2486_v33 = vld [vmem:[%s3197_s7 + $0x28] sm:$0xff]  }
 0x20d   : > { %v2377_v48 = vpop.f32.mrf.mxu0 }
 0x20e   : > { %v1703_v23 = vmax.f32 %v1684_v32, %v1685_v61  ;;  %v1690_v28 = vadd.f32 %v2377_v48, %v1576_v57  ;;  %v2487_v32 = vld [vmem:[%s3197_s7 + $0x20] sm:$0xff]   ;;  %v2488_v61 = vld [vmem:[%s3197_s7 + $0x18] sm:$0xff]   ;;  %v2489_v48 = vld [vmem:[%s3197_s7 + $0x10] sm:$0xff]  }
 0x20f   : > { %v1653_v55 = vpop.f32.mrf.mxu0  ;;  %v2286_v57 = vld [vmem:[#allocation2] ss:$0 sm:$0xff] }
 0x210   : > { %v1705_v7 = vmax.f32 %v1703_v23, %v1704_v39  ;;  %v1688_v12 = vadd.f32 %v1653_v55, %v1574_v60  ;;  %v2251_v60 = vld [vmem:[%s3196_s6] ss:$0 sm:$0xff] }
 0x211   : > { %v2378_v0 = vpop.f32.mrf.mxu0 }
 0x212   : > { %v1706_v5 = vpack.c.bf16 %v1705_v7, %v1705_v7  ;;  %v1767_v18 = vmax.f32 %v1687_v16, %v1688_v12  ;;  %v1691_v10 = vadd.f32 %v2378_v0, %v1577_v42 }
 0x213   : > { %v1656_v9 = vpop.f32.mrf.mxu0 }
 0x214   : > { %v1689_v13 = vadd.f32 %v1656_v9, %v1575_v4  ;;  %2388 = vmatmul.mubr.msk.bf16.vlgmr.msra.gmra.mxu1 %vm1336_vm0, %v1706_v5  ;;  %v1832_v20 = vmax.f32 %v1690_v28, %v1691_v10 }
 0x215   : > { %2392 = vmatpush3.bf16.msra.mxu1 %v2479_v1  ;;  %v2381_v34 = vpop.f32.mrf.mxu0  ;;  %2395 = vmatprep.mubr.msk.bf16.mxu1 %vm2518_vm1, %v2517_v62 }
 0x216   : > { %v1768_v31 = vmax.f32 %v1689_v13, 0.0  ;;  %2393 = vmatprep.subr.bf16.mxu1 %v2517_v62  ;;  %v1694_v25 = vadd.f32 %v2381_v34, %v1580_v63 }
 0x217   : > { %v1669_v14 = vpop.f32.mrf.mxu0 }
 0x218   : > { %v1769_v19 = vmax.f32 %v1767_v18, %v1768_v31  ;;  %v1692_v21 = vadd.f32 %v1669_v14, %v1578_v38  ;;  %v2285_v18 = vld [vmem:[%s3199_s9] ss:$0 sm:$0xff] }
 0x219   : > { %2394 = vmatpush3.bf16.msra.mxu1 %v2480_v35  ;;  %v2382_v24 = vpop.f32.mrf.mxu0  ;;  %v2276_v35 = vld [vmem:[%s3198_s8] ss:$0 sm:$0xff] }
 0x21a   : > { %v1770_v40 = vpack.c.bf16 %v1769_v19, %v1769_v19  ;;  %v1833_v41 = vmax.f32 %v1692_v21, 0.0  ;;  %v1695_v43 = vadd.f32 %v2382_v24, %v1581_v37  ;;  %2399 = vmatprep.subr.bf16.mxu1 %v2517_v62 }
 0x21b   : > { %v1672_v15 = vpop.f32.mrf.mxu0 }
 0x21c   : > { %v1693_v30 = vadd.f32 %v1672_v15, %v1579_v22  ;;  %2396 = vmatmul.mubr.msk.bf16.vlgmr.msra.gmra.mxu1 %vm1336_vm0, %v1770_v40  ;;  %v1834_v27 = vmax.f32 %v1832_v20, %v1833_v41  ;;  %v1898_v44 = vmax.f32 %v1695_v43, 0.0 }
 0x21d   : > { %2400 = vmatpush3.bf16.msra.mxu1 %v2482_v17  ;;  %2403 = vmatprep.mubr.msk.bf16.mxu1 %vm2518_vm1, %v2517_v62 }
 0x21e   : > { %v1897_v45 = vmax.f32 %v1693_v30, %v1694_v25  ;;  %2401 = vmatprep.subr.bf16.mxu1 %v2517_v62  ;;  %v1835_v46 = vpack.c.bf16 %v1834_v27, %v1834_v27 }
 0x220   : > { %v1899_v59 = vmax.f32 %v1897_v45, %v1898_v44 }
 0x221   : > { %2402 = vmatpush3.bf16.msra.mxu1 %v2483_v52 }
 0x222   : > { %v1900_v51 = vpack.c.bf16 %v1899_v59, %v1899_v59  ;;  %2415 = vmatprep.subr.bf16.mxu1 %v2517_v62 }
 0x224   : > { %2404 = vmatmul.mubr.msk.bf16.vlgmr.msra.gmra.mxu1 %vm1336_vm0, %v1835_v46  ;;  %2412 = vmatmul.mubr.msk.bf16.vlgmr.msra.gmra.mxu0 %vm1336_vm0, %v1900_v51 }
 0x225   : > { %2416 = vmatpush3.bf16.msra.mxu1 %v2484_v49  ;;  %2431 = vmatprep.mubr.msk.bf16.mxu1 %vm2518_vm1, %v2517_v62 }
 0x226   : > { %2417 = vmatprep.subr.bf16.mxu1 %v2517_v62 }
 0x229   : > { %2418 = vmatpush3.bf16.msra.mxu1 %v2485_v53 }
 0x22a   : > { %2419 = vmatprep.subr.bf16.mxu1 %v2517_v62 }
 0x22d   : > { %2420 = vmatpush3.bf16.msra.mxu1 %v2486_v33 }
 0x22e   : > { %2421 = vmatprep.subr.bf16.mxu1 %v2517_v62 }
 0x231   : > { %2422 = vmatpush3.bf16.msra.mxu1 %v2487_v32 }
 0x232   : > { %2423 = vmatprep.subr.bf16.mxu1 %v2517_v62 }
 0x235   : > { %2424 = vmatpush3.bf16.msra.mxu1 %v2488_v61 }
 0x236   : > { %2425 = vmatprep.subr.bf16.mxu1 %v2517_v62 }
 0x239   : > { %2426 = vmatpush3.bf16.msra.mxu1 %v2489_v48 }
 0x23a   : > { %2427 = vmatprep.subr.bf16.mxu1 %v2517_v62 }
 0x23d   : > { %2428 = vmatpush3.bf16.msra.mxu1 %v2490_v50 }
 0x23e   : > { %2429 = vmatprep.subr.bf16.mxu1 %v2517_v62 }
 0x241   : > { %2430 = vmatpush3.bf16.msra.mxu1 %v2491_v54 }
 0x2d4   : > { %v1760_v39 = vpop.f32.mrf.mxu1 }
 0x2d5   : > { %v1766_v1 = vadd.f32 %v2251_v60, %v1760_v39 }
 0x2d6   : > { %v2389_v23 = vpop.f32.mrf.mxu1 }
 0x2d8   : > { %v1763_v55 = vpop.f32.mrf.mxu1 }
 0x2da   : > { %v2390_v56 = vpop.f32.mrf.mxu1 }
 0x2dc   : > { %v1825_v58 = vpop.f32.mrf.mxu1 }
 0x2dd   : > { %v1831_v3 = vadd.f32 %v1825_v58, %v1766_v1 }
 0x2de   : > { %v2397_v7 = vpop.f32.mrf.mxu1 }
 0x2e0   : > { %v1828_v0 = vpop.f32.mrf.mxu1 }
 0x2e2   : > { %v2398_v2 = vpop.f32.mrf.mxu1 }
 0x2e4   : > { %v1890_v62 = vpop.f32.mrf.mxu1  ;;  %v1955_v4 = vpop.f32.mrf.mxu0 }
 0x2e5   : > { %v1896_v5 = vadd.f32 %v1890_v62, %v1831_v3 }
 0x2e6   : > { %v2405_v12 = vpop.f32.mrf.mxu1  ;;  %v2413_v9 = vpop.f32.mrf.mxu0 }
 0x2e7   : > { %v1961_v8 = vadd.f32 %v1955_v4, %v1896_v5 }
 0x2e8   : > { %v1893_v47 = vpop.f32.mrf.mxu1  ;;  %v1958_v16 = vpop.f32.mrf.mxu0 }
 0x2e9   : > { %v1962_v13 = vmax.f32 %v1961_v8, 0.0 }
 0x2ea   : > { %v2406_v26 = vpop.f32.mrf.mxu1  ;;  %v2414_v29 = vpop.f32.mrf.mxu0 }
 0x2eb   : > { %v1963_v34 = vpack.c.bf16 %v1962_v13, %v1962_v13 }
 0x2ed   : > { %2432 = vmatmul.mubr.bf16.vlgmr.msra.gmra.mxu1 %v1963_v34 }
 0x3ad   : > { %v2069_v38 = vpop.f32.mrf.mxu1 }
 0x3ae   : > { %v2070_v6 = vadd.f32 %v2276_v35, %v2069_v38 }
 0x3af   : > { %v2433_v42 = vpop.f32.mrf.mxu1 }
 0x3b0   : > { %v2075_v31 = vmax.f32 %v2070_v6, 0.0 }
 0x3b1   : > { %v2072_v36 = vpop.f32.mrf.mxu1 }
 0x3b2   : > { %v2083_v11 = vmul.f32 %v2285_v18, %v2075_v31 }
 0x3b3   : > { %v2434_v37 = vpop.f32.mrf.mxu1 }
 0x3b4   : > { %v2085_v14 = vsel %vm2084_vm2, %v2083_v11, 0.0 }
 0x3b5   : > { %2086 = vadd.xlane.f32.xlu0 %v2085_v14 }
 0x43e   : > { %v2087_v10 = vpop.xlane.xlu0 %2086 }
 0x43f   : > { %v2095_v19 = vadd.f32 %v2286_v57, %v2087_v10 }
 0x441   : > { %2097 = vst.msk [vmem:[%s659_s23] sm:$0xff] %vm2096_vm3, %v2095_v19 }
 0x442 PF: > { %p20_p9 = scmp.ge.s32.totalorder %s2599_s22, 4   ;;  %s3202_s19 = smov %s2510_s20 }
 0x443   : > { %s3203_s20 = smov %s2608_s25  ;;  %s3204_s21 = smov %s2599_s22 }
 0x444   :  { %22 = sbr.rel (!%p20_p9) target bundleno = 5 (0x5), region = 148 }

</bundles_post_ra>
